<compile_context>
chip_gen: v7x
topology: tpu7x:2x2x1
jax: 0.10.0
libtpu: 0.0.40
codegen_flags: <defaults>
</compile_context>

<pallas_src>
import functools

import jax
import jax.numpy as jnp
from jax import lax
from jax.experimental import pallas as pl
from jax.experimental.pallas import tpu as pltpu


def _round_up(x: int, m: int) -> int:
    return (x + m - 1) // m * m


# dot_general dimension_numbers used by the kernel.
_DN_NT = (((1,), (1,)), ((), ()))      # (m,k) x (n,k)   -> (m,n)   rhs transposed
_DN_TT = (((0,), (1,)), ((), ()))      # (k,m) x (n,k)   -> (m,n)   both transposed
_DN_QK = (((1,), (1,)), ((0,), (0,)))  # (h,d,q) x (h,d,k) -> (h,q,k)
_DN_PV = (((2,), (2,)), ((0,), (0,)))  # (h,d,k) x (h,q,k) -> (h,d,q)


def _mha_kernel(x_ref, wq_ref, wk_ref, wv_ref, wo_ref, b_ref, o_ref,
                k_scr, v_scr, *, n_heads: int, head_dim_p: int, q_tile: int,
                seq_valid: int, compute_dtype):
    qi = pl.program_id(1)
    seq = x_ref.shape[0]                # padded sequence length
    c_p = n_heads * head_dim_p          # padded inner channel count

    # --- K / V projections: once per batch element, stored head-major
    #     (H, Hd_p, T) in VMEM scratch and reused by every query tile.
    @pl.when(qi == 0)
    def _():
        x_all = x_ref[...]                                              # (T, C)
        k_t = lax.dot_general(wk_ref[...], x_all, _DN_NT,
                              preferred_element_type=jnp.float32)       # (C_p, T)
        v_t = lax.dot_general(wv_ref[...], x_all, _DN_NT,
                              preferred_element_type=jnp.float32)       # (C_p, T)
        k_scr[...] = k_t.reshape(n_heads, head_dim_p, seq).astype(compute_dtype)
        v_scr[...] = v_t.reshape(n_heads, head_dim_p, seq).astype(compute_dtype)

    # --- Q projection for this query tile (1/sqrt(head_dim) folded into wq) --
    q_start = pl.multiple_of(qi * q_tile, q_tile)
    xq = x_ref[pl.ds(q_start, q_tile), :]                               # (tq, C)
    q_t = lax.dot_general(wq_ref[...], xq, _DN_NT,
                          preferred_element_type=jnp.float32)           # (C_p, tq)
    q_h = q_t.astype(compute_dtype).reshape(n_heads, head_dim_p, q_tile)

    # --- scores: contract head_dim directly from the (H, Hd_p, tq) layout ---
    s = lax.dot_general(q_h, k_scr[...], _DN_QK,
                        preferred_element_type=jnp.float32)             # (H, tq, T)

    if seq_valid < seq:  # static branch: only when the wrapper padded T
        key_idx = lax.broadcasted_iota(jnp.int32, (1, 1, seq), 2)
        s = jnp.where(key_idx < seq_valid, s, -jnp.inf)

    # --- softmax with deferred normalization (exp in compute dtype, stats f32)
    m = jnp.max(s, axis=-1, keepdims=True)                              # (H, tq, 1)
    p = jnp.exp((s - m).astype(compute_dtype))                          # (H, tq, T)
    l = jnp.sum(p.astype(jnp.float32), axis=-1)                         # (H, tq)
    inv_l = pl.reciprocal(l, approx=True)                               # (H, tq)

    # --- P @ V (un-normalized), kept transposed so head concat is a free
    #     reshape; normalize the small (H, Hd_p, tq) context instead of P.
    ctx = lax.dot_general(v_scr[...], p, _DN_PV,
                          preferred_element_type=jnp.float32)           # (H, Hd_p, tq)
    ctx = ctx * inv_l[:, None, :]
    ctx = ctx.astype(compute_dtype).reshape(c_p, q_tile)                # (C_p, tq)

    # --- output projection directly in (tq, C) orientation; lane-aligned bias
    out = lax.dot_general(ctx, wo_ref[...], _DN_TT,
                          preferred_element_type=jnp.float32)           # (tq, C)
    o_ref[...] = (out + b_ref[...]).astype(o_ref.dtype)


def _pad_heads_rows(w, n_heads, head_dim, head_dim_p):
    """Pad per-head output rows of an (H*Hd, C) weight to (H*Hd_p, C)."""
    if head_dim_p == head_dim:
        return w
    c_in = w.shape[1]
    w = w.reshape(n_heads, head_dim, c_in)
    w = jnp.pad(w, ((0, 0), (0, head_dim_p - head_dim), (0, 0)))
    return w.reshape(n_heads * head_dim_p, c_in)


def _pad_heads_cols(w, n_heads, head_dim, head_dim_p):
    """Pad per-head input columns of a (C, H*Hd) weight to (C, H*Hd_p)."""
    if head_dim_p == head_dim:
        return w
    c_out = w.shape[0]
    w = w.reshape(c_out, n_heads, head_dim)
    w = jnp.pad(w, ((0, 0), (0, 0), (0, head_dim_p - head_dim)))
    return w.reshape(c_out, n_heads * head_dim_p)


def _vmem_limit_bytes(needed: int) -> int:
    cap = 128 * 1024 * 1024
    if jax.default_backend() == "tpu":
        try:
            cap = int(pltpu.get_tpu_info().vmem_capacity_bytes)
        except Exception:
            cap = 128 * 1024 * 1024
    # leave ~1/8 of physical VMEM as headroom for compiler-internal scratch
    return int(min(max(needed, 16 * 1024 * 1024), cap - cap // 8))


def multihead_attention(x, w_in, w_out, b_out, *, n_heads: int,
                        compute_dtype=None, out_dtype=None, q_tile=None):
    """Forward pass of MultiheadAttention (mask=None, dropout=0).

    x: (B, T, C); w_in: (3C, C); w_out: (C, C); b_out: (C,) in PyTorch layout.
    """
    b, t, c = x.shape
    assert c % n_heads == 0, "dim should be div by n_heads"
    head_dim = c // n_heads
    scale = float(head_dim) ** -0.5

    # bf16 MXU inputs (f32 accumulation) only when a real TPU backend is
    # present; plain f32 otherwise (CPU interpretation has no bf16 dot).
    if compute_dtype is None:
        compute_dtype = (jnp.bfloat16 if jax.default_backend() == "tpu"
                         else jnp.float32)
    if out_dtype is None:
        out_dtype = x.dtype  # TODO(synk): pass jnp.bfloat16 on v5e to halve writeback

    # head_dim padded to a multiple of 16: no sublane padding in the bf16
    # (H, Hd, T) scratch and free (C_p, tq) <-> (H, Hd_p, tq) reshapes.
    head_dim_p = _round_up(head_dim, 16)
    c_p = n_heads * head_dim_p

    # Query tile: always a full 128-lane multiple; pad T rather than shrinking
    # the tile below 128 (sub-128 tiles => masked stores + underfilled MXU).
    if q_tile is None:
        # tq=256 amortizes per-step overhead when the f32 score block stays
        # small (fine on v5e/v6e's 128 MiB VMEM).
        # TODO(synk): cap at 128 / add a KV tile axis with online softmax for
        # v7x (64 MiB VMEM) at long sequence lengths.
        score_bytes_256 = n_heads * 256 * _round_up(t, 256) * 4
        q_tile = 256 if (t >= 256 and score_bytes_256 <= 16 * 1024 * 1024) else 128
    t_pad = _round_up(t, q_tile)
    nq = t_pad // q_tile

    # ---- wrapper-side prep (PyTorch layout -> kernel layout) ---------------
    x_c = x.astype(compute_dtype)
    if t_pad != t:
        x_c = jnp.pad(x_c, ((0, 0), (0, t_pad - t), (0, 0)))

    w_q = _pad_heads_rows(w_in[0:c] * scale, n_heads, head_dim, head_dim_p)
    w_k = _pad_heads_rows(w_in[c:2 * c], n_heads, head_dim, head_dim_p)
    w_v = _pad_heads_rows(w_in[2 * c:3 * c], n_heads, head_dim, head_dim_p)
    w_o = _pad_heads_cols(w_out, n_heads, head_dim, head_dim_p)
    w_q = w_q.astype(compute_dtype)
    w_k = w_k.astype(compute_dtype)
    w_v = w_v.astype(compute_dtype)
    w_o = w_o.astype(compute_dtype)
    b_o = b_out.reshape(1, c).astype(jnp.float32)

    kernel = functools.partial(
        _mha_kernel, n_heads=n_heads, head_dim_p=head_dim_p, q_tile=q_tile,
        seq_valid=t, compute_dtype=compute_dtype)

    # ---- explicit VMEM budget from the actual buffer sizes -----------------
    it = jnp.dtype(compute_dtype).itemsize
    needed = (2 * t_pad * c * it                              # x block (dbl buf)
              + 2 * (3 * c_p * c + c * c_p + c) * it          # weights + bias
              + 2 * n_heads * head_dim_p * t_pad * it         # K / V scratch
              + 2 * q_tile * c * jnp.dtype(out_dtype).itemsize  # out block
              + n_heads * q_tile * t_pad * (4 + it)           # f32 scores + probs
              + 4 * n_heads * head_dim_p * q_tile * 4)        # q / ctx temporaries
    vmem_limit = _vmem_limit_bytes(int(needed * 2))

    out = pl.pallas_call(
        kernel,
        out_shape=jax.ShapeDtypeStruct((b, t_pad, c), out_dtype),
        grid_spec=pltpu.PrefetchScalarGridSpec(
            num_scalar_prefetch=0,
            grid=(b, nq),
            in_specs=[
                pl.BlockSpec((None, t_pad, c), lambda bi, qi: (bi, 0, 0)),  # x
                # TODO(synk): pipeline_mode=pl.Buffered(1) on the constant
                # weight specs would halve their VMEM footprint on v7x.
                pl.BlockSpec((c_p, c), lambda bi, qi: (0, 0)),   # w_q (scaled)
                pl.BlockSpec((c_p, c), lambda bi, qi: (0, 0)),   # w_k
                pl.BlockSpec((c_p, c), lambda bi, qi: (0, 0)),   # w_v
                pl.BlockSpec((c, c_p), lambda bi, qi: (0, 0)),   # w_out
                pl.BlockSpec((1, c), lambda bi, qi: (0, 0)),     # bias
            ],
            out_specs=pl.BlockSpec((None, q_tile, c), lambda bi, qi: (bi, qi, 0)),
            scratch_shapes=[
                pltpu.VMEM((n_heads, head_dim_p, t_pad), compute_dtype),  # K
                pltpu.VMEM((n_heads, head_dim_p, t_pad), compute_dtype),  # V
            ],
        ),
        compiler_params=pltpu.CompilerParams(
            # qi is sequential ("arbitrary"): K/V scratch written at qi == 0
            # is reused by later query tiles of the same batch element.
            dimension_semantics=("parallel", "arbitrary"),
            vmem_limit_bytes=vmem_limit),
    )(x_c, w_q, w_k, w_v, w_o, b_o)

    return out[:, :t, :] if t_pad != t else out


def _reference(x, w_in, w_out, b_out, n_heads):
    """Pure-JAX f32 reference mirroring the PyTorch forward (mask=None, p=0)."""
    b, t, c = x.shape
    hd = c // n_heads
    scale = hd ** -0.5
    qkv = x @ w_in.T                                   # (B, T, 3C)
    q, k, v = jnp.split(qkv, 3, axis=-1)

    def heads(a):
        return a.reshape(b, t, n_heads, hd).transpose(0, 2, 1, 3)

    q, k, v = heads(q), heads(k), heads(v)
    s = jnp.einsum("bhqd,bhkd->bhqk", q, k) * scale
    p = jax.nn.softmax(s, axis=-1)
    o = jnp.einsum("bhqk,bhkd->bhqd", p, v)
    o = o.transpose(0, 2, 1, 3).reshape(b, t, c)
    return o @ w_out.T + b_out


if __name__ == "__main__":
    # Small deterministic problem: batch=2, seq=8, dim=32, heads=4 (head_dim=8)
    B, T, DIM, N_HEADS = 2, 8, 32, 4

    key = jax.random.PRNGKey(0)
    kx, kwi, kwo, kbo = jax.random.split(key, 4)

    x = jax.random.normal(kx, (B, T, DIM), dtype=jnp.float32)
    w_in = jax.random.normal(kwi, (3 * DIM, DIM), dtype=jnp.float32) * 0.05
    w_out = jax.random.normal(kwo, (DIM, DIM), dtype=jnp.float32) * 0.05
    b_out = jax.random.normal(kbo, (DIM,), dtype=jnp.float32) * 0.05

    out = multihead_attention(x, w_in, w_out, b_out, n_heads=N_HEADS)
    out = jax.block_until_ready(out)

    ref = _reference(x, w_in, w_out, b_out, N_HEADS)
    assert out.shape == (B, T, DIM)
    max_err = float(jnp.max(jnp.abs(out - ref)))
    # bf16 matmul inputs (on TPU) + approximate reciprocal -> loose tolerance.
    assert jnp.allclose(out, ref, atol=2e-2, rtol=2e-2), (
        f"mismatch vs reference, max abs err {max_err}")

    print("KERNEL_OK")
</pallas_src>

<mosaic_0001>
module attributes {stable_mosaic.version = 11 : i64} {
  func.func @_mha_kernel(%arg0: i32, %arg1: i32, %arg2: memref<1x128x32xf32, #tpu.memory_space<vmem>>, %arg3: memref<64x32xf32, #tpu.memory_space<vmem>>, %arg4: memref<64x32xf32, #tpu.memory_space<vmem>>, %arg5: memref<64x32xf32, #tpu.memory_space<vmem>>, %arg6: memref<32x64xf32, #tpu.memory_space<vmem>>, %arg7: memref<1x32xf32, #tpu.memory_space<vmem>>, %arg8: memref<1x128x32xf32, #tpu.memory_space<vmem>>, %arg9: memref<4x16x128xf32, #tpu.memory_space<vmem>>, %arg10: memref<4x16x128xf32, #tpu.memory_space<vmem>>) attributes {dimension_semantics = [#tpu.dimension_semantics<parallel>, #tpu.dimension_semantics<arbitrary>], iteration_bounds = array<i64: 2, 1>, scalar_prefetch = 0 : i64, scratch_operands = 2 : i64, tpu.core_type = #tpu.core_type<tc>, window_params = [{transform_indices = @transform_0, window_bounds = array<i64: 1, 128, 32>}, {pipeline_mode = #tpu.pipeline_mode<synchronous>, transform_indices = @transform_1, window_bounds = array<i64: 64, 32>}, {pipeline_mode = #tpu.pipeline_mode<synchronous>, transform_indices = @transform_2, window_bounds = array<i64: 64, 32>}, {pipeline_mode = #tpu.pipeline_mode<synchronous>, transform_indices = @transform_3, window_bounds = array<i64: 64, 32>}, {pipeline_mode = #tpu.pipeline_mode<synchronous>, transform_indices = @transform_4, window_bounds = array<i64: 32, 64>}, {pipeline_mode = #tpu.pipeline_mode<synchronous>, transform_indices = @transform_5, window_bounds = array<i64: 1, 32>}, {transform_indices = @transform_6, window_bounds = array<i64: 1, 128, 32>}]} {
    %c0_i32 = arith.constant 0 : i32
    %0 = arith.cmpi eq, %arg1, %c0_i32 : i32
    %1 = arith.extui %0 : i1 to i32
    %c0_i32_0 = arith.constant 0 : i32
    %2 = arith.cmpi ne, %1, %c0_i32_0 : i32
    scf.if %2 {
      %c0_23 = arith.constant 0 : index
      %c0_24 = arith.constant 0 : index
      %c0_25 = arith.constant 0 : index
      %41 = vector.load %arg2[%c0_23, %c0_24, %c0_25] : memref<1x128x32xf32, #tpu.memory_space<vmem>>, vector<1x128x32xf32>
      %42 = vector.shape_cast %41 : vector<1x128x32xf32> to vector<128x32xf32>
      %c0_26 = arith.constant 0 : index
      %c0_27 = arith.constant 0 : index
      %43 = vector.load %arg4[%c0_26, %c0_27] : memref<64x32xf32, #tpu.memory_space<vmem>>, vector<64x32xf32>
      %cst_28 = arith.constant dense<0.000000e+00> : vector<64x128xf32>
      %44 = tpu.matmul %43, %42, %cst_28 {dimension_numbers = #tpu.dot_dimension_numbers<[1], [1], [0], [0], [0, 0, 1, 0], [], []>} : vector<64x32xf32>, vector<128x32xf32>, vector<64x128xf32> -> vector<64x128xf32>
      %c0_29 = arith.constant 0 : index
      %c0_30 = arith.constant 0 : index
      %45 = vector.load %arg5[%c0_29, %c0_30] : memref<64x32xf32, #tpu.memory_space<vmem>>, vector<64x32xf32>
      %cst_31 = arith.constant dense<0.000000e+00> : vector<64x128xf32>
      %46 = tpu.matmul %45, %42, %cst_31 {dimension_numbers = #tpu.dot_dimension_numbers<[1], [1], [0], [0], [0, 0, 1, 0], [], []>} : vector<64x32xf32>, vector<128x32xf32>, vector<64x128xf32> -> vector<64x128xf32>
      %47 = vector.shape_cast %44 : vector<64x128xf32> to vector<4x16x128xf32>
      %c0_32 = arith.constant 0 : index
      %c0_33 = arith.constant 0 : index
      %c0_34 = arith.constant 0 : index
      %48 = vector.load %arg9[%c0_32, %c0_33, %c0_34] : memref<4x16x128xf32, #tpu.memory_space<vmem>>, vector<4x16x128xf32>
      tpu.vector_store %arg9[%c0_32, %c0_33, %c0_34], %47 {strides = array<i32>} : memref<4x16x128xf32, #tpu.memory_space<vmem>>, vector<4x16x128xf32>,
      %49 = vector.shape_cast %46 : vector<64x128xf32> to vector<4x16x128xf32>
      %c0_35 = arith.constant 0 : index
      %c0_36 = arith.constant 0 : index
      %c0_37 = arith.constant 0 : index
      %50 = vector.load %arg10[%c0_35, %c0_36, %c0_37] : memref<4x16x128xf32, #tpu.memory_space<vmem>>, vector<4x16x128xf32>
      tpu.vector_store %arg10[%c0_35, %c0_36, %c0_37], %49 {strides = array<i32>} : memref<4x16x128xf32, #tpu.memory_space<vmem>>, vector<4x16x128xf32>,
    } else {
    }
    %c128_i32 = arith.constant 128 : i32
    %3 = arith.muli %arg1, %c128_i32 : i32
    %4 = tpu.assume_multiple %3, 128 : i32
    %c0 = arith.constant 0 : index
    %5 = arith.index_cast %4 : i32 to index
    %c0_1 = arith.constant 0 : index
    %6 = vector.load %arg2[%c0, %5, %c0_1] : memref<1x128x32xf32, #tpu.memory_space<vmem>>, vector<1x128x32xf32>
    %7 = vector.shape_cast %6 : vector<1x128x32xf32> to vector<128x32xf32>
    %c0_2 = arith.constant 0 : index
    %c0_3 = arith.constant 0 : index
    %8 = vector.load %arg3[%c0_2, %c0_3] : memref<64x32xf32, #tpu.memory_space<vmem>>, vector<64x32xf32>
    %cst = arith.constant dense<0.000000e+00> : vector<64x128xf32>
    %9 = tpu.matmul %8, %7, %cst {dimension_numbers = #tpu.dot_dimension_numbers<[1], [1], [0], [0], [0, 0, 1, 0], [], []>} : vector<64x32xf32>, vector<128x32xf32>, vector<64x128xf32> -> vector<64x128xf32>
    %10 = vector.shape_cast %9 : vector<64x128xf32> to vector<4x16x128xf32>
    %c0_4 = arith.constant 0 : index
    %c0_5 = arith.constant 0 : index
    %c0_6 = arith.constant 0 : index
    %11 = vector.load %arg9[%c0_4, %c0_5, %c0_6] : memref<4x16x128xf32, #tpu.memory_space<vmem>>, vector<4x16x128xf32>
    %cst_7 = arith.constant dense<0.000000e+00> : vector<4x128x128xf32>
    %12 = tpu.matmul %10, %11, %cst_7 {dimension_numbers = #tpu.dot_dimension_numbers<[1], [1], [2], [2], [0, 0, 0, 2, 1, 2], [0], [0]>} : vector<4x16x128xf32>, vector<4x16x128xf32>, vector<4x128x128xf32> -> vector<4x128x128xf32>
    %13 = tpu.iota {dimensions = array<i32: 2>} : vector<1x1x128xi32>
    %c8_i32 = arith.constant 8 : i32
    %14 = vector.broadcast %c8_i32 : i32 to vector<1x1x128xi32>
    %15 = arith.cmpi slt, %13, %14 : vector<1x1x128xi32>
    %cst_8 = arith.constant 0xFF800000 : f32
    %16 = vector.shape_cast %15 : vector<1x1x128xi1> to vector<1x1x128xi1>
    %17 = vector.broadcast %16 : vector<1x1x128xi1> to vector<4x128x128xi1>
    %18 = vector.broadcast %cst_8 : f32 to vector<4x128x128xf32>
    %19 = arith.select %17, %12, %18 : vector<4x128x128xi1>, vector<4x128x128xf32>
    %cst_9 = arith.constant dense<0xFF800000> : vector<4x128xf32>
    %20 = vector.multi_reduction <maximumf>, %19, %cst_9 [2] : vector<4x128x128xf32> to vector<4x128xf32>
    %21 = vector.shape_cast %20 : vector<4x128xf32> to vector<4x128x1xf32>
    %22 = vector.broadcast %21 : vector<4x128x1xf32> to vector<4x128x128xf32>
    %23 = arith.subf %19, %22 : vector<4x128x128xf32>
    %24 = math.exp %23 : vector<4x128x128xf32>
    %cst_10 = arith.constant dense<0.000000e+00> : vector<4x128xf32>
    %25 = vector.multi_reduction <add>, %24, %cst_10 [2] : vector<4x128x128xf32> to vector<4x128xf32>
    %26 = tpu.reciprocal %25 {approx = true} : vector<4x128xf32> -> vector<4x128xf32>
    %c0_11 = arith.constant 0 : index
    %c0_12 = arith.constant 0 : index
    %c0_13 = arith.constant 0 : index
    %27 = vector.load %arg10[%c0_11, %c0_12, %c0_13] : memref<4x16x128xf32, #tpu.memory_space<vmem>>, vector<4x16x128xf32>
    %cst_14 = arith.constant dense<0.000000e+00> : vector<4x16x128xf32>
    %28 = tpu.matmul %27, %24, %cst_14 {dimension_numbers = #tpu.dot_dimension_numbers<[2], [2], [1], [1], [0, 0, 0, 1, 1, 1], [0], [0]>} : vector<4x16x128xf32>, vector<4x128x128xf32>, vector<4x16x128xf32> -> vector<4x16x128xf32>
    %29 = vector.shape_cast %26 : vector<4x128xf32> to vector<4x1x128xf32>
    %30 = vector.broadcast %29 : vector<4x1x128xf32> to vector<4x16x128xf32>
    %31 = arith.mulf %28, %30 : vector<4x16x128xf32>
    %32 = vector.shape_cast %31 : vector<4x16x128xf32> to vector<64x128xf32>
    %c0_15 = arith.constant 0 : index
    %c0_16 = arith.constant 0 : index
    %33 = vector.load %arg6[%c0_15, %c0_16] : memref<32x64xf32, #tpu.memory_space<vmem>>, vector<32x64xf32>
    %cst_17 = arith.constant dense<0.000000e+00> : vector<128x32xf32>
    %34 = tpu.matmul %32, %33, %cst_17 {dimension_numbers = #tpu.dot_dimension_numbers<[0], [1], [1], [0], [0, 1, 1, 0], [], []>} : vector<64x128xf32>, vector<32x64xf32>, vector<128x32xf32> -> vector<128x32xf32>
    %c0_18 = arith.constant 0 : index
    %c0_19 = arith.constant 0 : index
    %35 = vector.load %arg7[%c0_18, %c0_19] : memref<1x32xf32, #tpu.memory_space<vmem>>, vector<1x32xf32>
    %36 = vector.broadcast %35 : vector<1x32xf32> to vector<128x32xf32>
    %37 = arith.addf %34, %36 : vector<128x32xf32>
    %c0_20 = arith.constant 0 : index
    %c0_21 = arith.constant 0 : index
    %c0_22 = arith.constant 0 : index
    %38 = vector.load %arg8[%c0_20, %c0_21, %c0_22] : memref<1x128x32xf32, #tpu.memory_space<vmem>>, vector<1x128x32xf32>
    %39 = vector.shape_cast %38 : vector<1x128x32xf32> to vector<128x32xf32>
    %40 = vector.shape_cast %37 : vector<128x32xf32> to vector<1x128x32xf32>
    tpu.vector_store %arg8[%c0_20, %c0_21, %c0_22], %40 {strides = array<i32>} : memref<1x128x32xf32, #tpu.memory_space<vmem>>, vector<1x128x32xf32>,
    return
  }
  func.func @transform_0(%arg0: i32, %arg1: i32) -> (i32, i32, i32) {
    %c0_i32 = arith.constant 0 : i32
    %c0_i32_0 = arith.constant 0 : i32
    %c0_i32_1 = arith.constant 0 : i32
    return %arg0, %c0_i32, %c0_i32_0 : i32, i32, i32
  }
  func.func @transform_1(%arg0: i32, %arg1: i32) -> (i32, i32) {
    %c0_i32 = arith.constant 0 : i32
    %c0_i32_0 = arith.constant 0 : i32
    %c0_i32_1 = arith.constant 0 : i32
    return %c0_i32, %c0_i32_0 : i32, i32
  }
  func.func @transform_2(%arg0: i32, %arg1: i32) -> (i32, i32) {
    %c0_i32 = arith.constant 0 : i32
    %c0_i32_0 = arith.constant 0 : i32
    %c0_i32_1 = arith.constant 0 : i32
    return %c0_i32, %c0_i32_0 : i32, i32
  }
  func.func @transform_3(%arg0: i32, %arg1: i32) -> (i32, i32) {
    %c0_i32 = arith.constant 0 : i32
    %c0_i32_0 = arith.constant 0 : i32
    %c0_i32_1 = arith.constant 0 : i32
    return %c0_i32, %c0_i32_0 : i32, i32
  }
  func.func @transform_4(%arg0: i32, %arg1: i32) -> (i32, i32) {
    %c0_i32 = arith.constant 0 : i32
    %c0_i32_0 = arith.constant 0 : i32
    %c0_i32_1 = arith.constant 0 : i32
    return %c0_i32, %c0_i32_0 : i32, i32
  }
  func.func @transform_5(%arg0: i32, %arg1: i32) -> (i32, i32) {
    %c0_i32 = arith.constant 0 : i32
    %c0_i32_0 = arith.constant 0 : i32
    %c0_i32_1 = arith.constant 0 : i32
    return %c0_i32, %c0_i32_0 : i32, i32
  }
  func.func @transform_6(%arg0: i32, %arg1: i32) -> (i32, i32, i32) {
    %c0_i32 = arith.constant 0 : i32
    %c0_i32_0 = arith.constant 0 : i32
    return %arg0, %arg1, %c0_i32 : i32, i32, i32
  }
}

</mosaic_0001>

<bundles_post_ra>
// kernel: tpu_custom_call.1
= control target key start
LH: loop header
LB: loop body
LE: loop exit
PB: predicated region body
PF: predicated region fallthrough
CT: control target
= control target key end

     0   :  { %s4902_s21 = smov 0   ;;  %s4904_s22 = smov 0   ;;  %s6260_s0 = inlined_call_operand.vmem [shape: f32[2,128,32], index: 0, kind: input, shape index: {}]   ;;  %s6261_s1 = inlined_call_operand.vmem [shape: f32[64,32], index: 1, kind: input, shape index: {}]   ;;  %s6262_s2 = inlined_call_operand.vmem [shape: f32[64,32], index: 2, kind: input, shape index: {}]   ;;  %s6263_s3 = inlined_call_operand.vmem [shape: f32[64,32], index: 3, kind: input, shape index: {}]   ;;  %s6264_s4 = inlined_call_operand.vmem [shape: f32[32,64], index: 4, kind: input, shape index: {}]   ;;  %s6265_s5 = inlined_call_operand.vmem [shape: f32[1,32], index: 5, kind: input, shape index: {}]   ;;  %s6266_s6 = inlined_call_operand.vmem [shape: f32[2,128,32], index: 6, kind: output, shape index: {}]  }
   0x1   :  { %s4906_s23 = smov 0  }
   0x2 LB: > { %s28_s24 = sadd.s32 1, %s4861_s22  ;;  %p3440_p0 = scmp.ge.s32.totalorder %s4865_s23, 1  ;;  %s4865_s23 = sphi %s4906_s23, %s16_s23   ;;  %s4861_s22 = sphi %s4904_s22, %s6346_s22   ;;  %s4857_s21 = sphi %s4902_s21, %s6345_s21  }
   0x3   : > { %p30_p1 = scmp.ge.s32.totalorder %s28_s24, 2  ;;  %p226_p2 = scmp.lt.s32.totalorder %s4865_s23, 3 }
   0x5   : > { %s6348_s24 = smov (%p30_p1, %s28_s24), 0  ;;  %p227_p3 = pnand %p3440_p0, %p226_p2 }
   0x7   : > { %230 = sbr.rel (%p227_p3) target bundleno = 1660 (0x67c), region = 44 }
   0xe   : > { %p260_p4 = scmp.lt.s32.totalorder %s4857_s21, 1  ;;  %vm6283_vm0 = vcmask 261120   ;;  %v295_v0 = vld [vmem:[%s6262_s2] sm:$0xff]  ;;  %v296_v26 = vld [vmem:[%s6262_s2 + $0x8] sm:$0xff]  ;;  %v297_v27 = vld [vmem:[%s6262_s2 + $0x10] sm:$0xff]  ;;  %vm878_vm2 = vcmask 130048  }
   0xf   : > { %3874 = vmatprep.mubr.msk.f32.mxu0 %vm6283_vm0, %v295_v0  ;;  %vm4936_vm1 = vmpackc.low %vm6283_vm0, %vm6283_vm0  ;;  %v298_v28 = vld [vmem:[%s6262_s2 + $0x18] sm:$0xff]  ;;  %v299_v29 = vld [vmem:[%s6262_s2 + $0x20] sm:$0xff]  ;;  %vm2709_vm4 = vcmask 130112   ;;  %vm2716_vm5 = vcmask 195712   ;;  %vm2723_vm6 = vcmask 261312   ;;  %vm3131_vm7 = vcmask 523264  }
  0x10   : > { %s6350_s21 = smov (!%p260_p4, %s4857_s21), 1  ;;  %v300_v30 = vld [vmem:[%s6262_s2 + $0x28] sm:$0xff]  ;;  %v301_v31 = vld [vmem:[%s6262_s2 + $0x30] sm:$0xff]  ;;  %v302_v32 = vld [vmem:[%s6262_s2 + $0x38] sm:$0xff]  ;;  %vm2730_vm9 = vcmask 326912   ;;  %vm2737_vm10 = vcmask 392512  }
  0x11   : > { %s3604_s27 = sshll.u32 %s6350_s21, 7  ;;  %v652_v33 = vld [vmem:[%s6261_s1] sm:$0xff]  ;;  %v653_v34 = vld [vmem:[%s6261_s1 + $0x8] sm:$0xff]  ;;  %v654_v35 = vld [vmem:[%s6261_s1 + $0x10] sm:$0xff]  ;;  %vm2744_vm11 = vcmask 458112   ;;  %vm2751_vm12 = vcmask 523712  }
  0x12   : > { %s4932_s30 = scalar_lea.vmem %s6260_s0, %s3604_s27  ;;  %v655_v36 = vld [vmem:[%s6261_s1 + $0x18] sm:$0xff]  ;;  %v656_v37 = vld [vmem:[%s6261_s1 + $0x20] sm:$0xff]  ;;  %v657_v38 = vld [vmem:[%s6261_s1 + $0x28] sm:$0xff]  ;;  %vm2758_vm13 = vcmask 589312   ;;  %vm2772_vm14 = vcmask 720512   ;;  %vm2765_vm15 = vcmask 654912   ;;  %s6217_s8 = scalar_lea.vmem %s6266_s6, %s3604_s27 }
  0x13   : > { %v279_v2 = vld [vmem:[%s4932_s30] sm:$0xff]  ;;  %v280_v3 = vld [vmem:[%s4932_s30 + $0x8] sm:$0xff]  ;;  %v281_v4 = vld [vmem:[%s4932_s30 + $0x10] sm:$0xff] }
  0x14   : > { %v4258_v5 = vpack.c.bf16 %v280_v3, %v279_v2  ;;  %v282_v6 = vld [vmem:[%s4932_s30 + $0x18] sm:$0xff]  ;;  %v283_v8 = vld [vmem:[%s4932_s30 + $0x20] sm:$0xff]  ;;  %v284_v9 = vld [vmem:[%s4932_s30 + $0x28] sm:$0xff] }
  0x15   : > { %v4944_v7 = vpack.c.bf16 %v282_v6, %v281_v4  ;;  %v4962_v10 = vpack.c.bf16 %v284_v9, %v283_v8  ;;  %v285_v11 = vld [vmem:[%s4932_s30 + $0x30] sm:$0xff]  ;;  %v286_v12 = vld [vmem:[%s4932_s30 + $0x38] sm:$0xff]  ;;  %v287_v14 = vld [vmem:[%s4932_s30 + $0x40] sm:$0xff] }
  0x16   : > { %4260 = vmatprep.subr.msk.bf16.mxu0 %vm4936_vm1, %v4258_v5  ;;  %4308 = vmatprep.subr.msk.bf16.mxu1 %vm4936_vm1, %v4258_v5  ;;  %v4276_v13 = vpack.c.bf16 %v286_v12, %v285_v11  ;;  %v288_v15 = vld [vmem:[%s4932_s30 + $0x48] sm:$0xff]  ;;  %v289_v17 = vld [vmem:[%s4932_s30 + $0x50] sm:$0xff]  ;;  %v290_v18 = vld [vmem:[%s4932_s30 + $0x58] sm:$0xff] }
  0x17   : > { %4263 = vmatpush3.bf16.xpose.msk.msra.mxu0 %vm4936_vm1, %v4258_v5  ;;  %4311 = vmatpush3.bf16.xpose.msk.msra.mxu1 %vm4936_vm1, %v4258_v5  ;;  %v4282_v16 = vpack.c.bf16 %v288_v15, %v287_v14  ;;  %v4288_v19 = vpack.c.bf16 %v290_v18, %v289_v17  ;;  %v291_v20 = vld [vmem:[%s4932_s30 + $0x60] sm:$0xff]  ;;  %v292_v21 = vld [vmem:[%s4932_s30 + $0x68] sm:$0xff]  ;;  %v293_v23 = vld [vmem:[%s4932_s30 + $0x70] sm:$0xff] }
  0x18   : > { %4266 = vmatprep.subr.msk.bf16.mxu0 %vm4936_vm1, %v4944_v7  ;;  %4314 = vmatprep.subr.msk.bf16.mxu1 %vm4936_vm1, %v4944_v7  ;;  %v4294_v22 = vpack.c.bf16 %v292_v21, %v291_v20  ;;  %v294_v24 = vld [vmem:[%s4932_s30 + $0x78] sm:$0xff]  ;;  %v658_v39 = vld [vmem:[%s6261_s1 + $0x30] sm:$0xff]  ;;  %v481_v41 = vld [vmem:[%s6263_s3] sm:$0xff] }
  0x19   : > { %v4300_v25 = vpack.c.bf16 %v294_v24, %v293_v23  ;;  %v659_v40 = vld [vmem:[%s6261_s1 + $0x38] sm:$0xff]  ;;  %3918 = vmatprep.mubr.msk.f32.mxu1 %vm6283_vm0, %v481_v41  ;;  %v482_v42 = vld [vmem:[%s6263_s3 + $0x8] sm:$0xff]  ;;  %v483_v43 = vld [vmem:[%s6263_s3 + $0x10] sm:$0xff] }
  0x1a   : > { %v484_v44 = vld [vmem:[%s6263_s3 + $0x18] sm:$0xff]  ;;  %v485_v48 = vld [vmem:[%s6263_s3 + $0x20] sm:$0xff]  ;;  %v486_v49 = vld [vmem:[%s6263_s3 + $0x28] sm:$0xff] }
  0x1b   : > { %v487_v53 = vld [vmem:[%s6263_s3 + $0x30] sm:$0xff]  ;;  %v488_v54 = vld [vmem:[%s6263_s3 + $0x38] sm:$0xff]  ;;  %vm5959_vm8 = vmpackc.low %vm3131_vm7, %vm3131_vm7 }
  0x1f   : > { %4269 = vmatpush3.bf16.xpose.msk.msra.mxu0 %vm4936_vm1, %v4944_v7  ;;  %4317 = vmatpush3.bf16.xpose.msk.msra.mxu1 %vm4936_vm1, %v4944_v7 }
  0x20   : > { %4272 = vmatprep.subr.msk.bf16.mxu0 %vm4936_vm1, %v4962_v10  ;;  %4320 = vmatprep.subr.msk.bf16.mxu1 %vm4936_vm1, %v4962_v10 }
  0x27   : > { %4275 = vmatpush3.bf16.xpose.msk.msra.mxu0 %vm4936_vm1, %v4962_v10  ;;  %4323 = vmatpush3.bf16.xpose.msk.msra.mxu1 %vm4936_vm1, %v4962_v10 }
  0x28   : > { %4278 = vmatprep.subr.msk.bf16.mxu0 %vm4936_vm1, %v4276_v13  ;;  %4326 = vmatprep.subr.msk.bf16.mxu1 %vm4936_vm1, %v4276_v13 }
  0x2f   : > { %4281 = vmatpush3.bf16.xpose.msk.msra.mxu0 %vm4936_vm1, %v4276_v13  ;;  %4329 = vmatpush3.bf16.xpose.msk.msra.mxu1 %vm4936_vm1, %v4276_v13 }
  0x30   : > { %4284 = vmatprep.subr.msk.bf16.mxu0 %vm4936_vm1, %v4282_v16  ;;  %4332 = vmatprep.subr.msk.bf16.mxu1 %vm4936_vm1, %v4282_v16 }
  0x37   : > { %4287 = vmatpush3.bf16.xpose.msk.msra.mxu0 %vm4936_vm1, %v4282_v16  ;;  %4335 = vmatpush3.bf16.xpose.msk.msra.mxu1 %vm4936_vm1, %v4282_v16 }
  0x38   : > { %4290 = vmatprep.subr.msk.bf16.mxu0 %vm4936_vm1, %v4288_v19  ;;  %4338 = vmatprep.subr.msk.bf16.mxu1 %vm4936_vm1, %v4288_v19 }
  0x3f   : > { %4293 = vmatpush3.bf16.xpose.msk.msra.mxu0 %vm4936_vm1, %v4288_v19  ;;  %4341 = vmatpush3.bf16.xpose.msk.msra.mxu1 %vm4936_vm1, %v4288_v19 }
  0x40   : > { %4296 = vmatprep.subr.msk.bf16.mxu0 %vm4936_vm1, %v4294_v22  ;;  %4344 = vmatprep.subr.msk.bf16.mxu1 %vm4936_vm1, %v4294_v22 }
  0x47   : > { %4299 = vmatpush3.bf16.xpose.msk.msra.mxu0 %vm4936_vm1, %v4294_v22  ;;  %4347 = vmatpush3.bf16.xpose.msk.msra.mxu1 %vm4936_vm1, %v4294_v22 }
  0x48   : > { %4302 = vmatprep.subr.msk.bf16.mxu0 %vm4936_vm1, %v4300_v25  ;;  %4350 = vmatprep.subr.msk.bf16.mxu1 %vm4936_vm1, %v4300_v25 }
  0x4f   : > { %4305 = vmatpush3.bf16.xpose.msk.msra.mxu0 %vm4936_vm1, %v4300_v25  ;;  %4353 = vmatpush3.bf16.xpose.msk.msra.mxu1 %vm4936_vm1, %v4300_v25 }
  0x50   : > { %4356 = vmatprep.subr.msk.bf16.mxu0 %vm4936_vm1, %v4258_v5 }
  0x56   : > { %3875 = vmatmul.mubr.msk.f32.vlgmr.msra.gmra.mrb[0].mxu0 %vm6283_vm0, %v296_v26  ;;  %3919 = vmatmul.mubr.msk.f32.vlgmr.msra.gmra.mrb[0].mxu1 %vm6283_vm0, %v482_v42 }
  0x57   : > { %4359 = vmatpush3.bf16.xpose.msk.msra.mxu0 %vm4936_vm1, %v4258_v5  ;;  %3877 = vmatprep.mubr.msk.f32.mxu0 %vm6283_vm0, %v297_v27 }
  0x58   : > { %4362 = vmatprep.subr.msk.bf16.mxu0 %vm4936_vm1, %v4944_v7  ;;  %3921 = vmatprep.mubr.msk.f32.mxu1 %vm6283_vm0, %v483_v43 }
  0x5a   : > { %3878 = vmatmul.mubr.msk.f32.gmra.mrb[2].mxu0 %vm6283_vm0, %v298_v28  ;;  %3922 = vmatmul.mubr.msk.f32.gmra.mrb[2].mxu1 %vm6283_vm0, %v484_v44 }
  0x5b   : > { %3880 = vmatprep.mubr.msk.f32.mxu0 %vm6283_vm0, %v299_v29  ;;  %3924 = vmatprep.mubr.msk.f32.mxu1 %vm6283_vm0, %v485_v48 }
  0x5e   : > { %3881 = vmatmul.mubr.msk.f32.gmra.mrb[4].mxu0 %vm6283_vm0, %v300_v30  ;;  %3925 = vmatmul.mubr.msk.f32.gmra.mrb[4].mxu1 %vm6283_vm0, %v486_v49 }
  0x5f   : > { %4365 = vmatpush3.bf16.xpose.msk.msra.mxu0 %vm4936_vm1, %v4944_v7  ;;  %3883 = vmatprep.mubr.msk.f32.mxu0 %vm6283_vm0, %v301_v31 }
  0x60   : > { %4368 = vmatprep.subr.msk.bf16.mxu0 %vm4936_vm1, %v4962_v10  ;;  %3927 = vmatprep.mubr.msk.f32.mxu1 %vm6283_vm0, %v487_v53 }
  0x62   : > { %3884 = vmatmul.mubr.msk.f32.gmra.mrb[6].mxu0 %vm6283_vm0, %v302_v32  ;;  %3928 = vmatmul.mubr.msk.f32.gmra.mrb[6].mxu1 %vm6283_vm0, %v488_v54 }
  0x63   : > { %3962 = vmatprep.mubr.msk.f32.mxu0 %vm6283_vm0, %v652_v33 }
  0x67   : > { %4371 = vmatpush3.bf16.xpose.msk.msra.mxu0 %vm4936_vm1, %v4962_v10 }
  0x68   : > { %4374 = vmatprep.subr.msk.bf16.mxu0 %vm4936_vm1, %v4276_v13 }
  0x6f   : > { %4377 = vmatpush3.bf16.xpose.msk.msra.mxu0 %vm4936_vm1, %v4276_v13 }
  0x70   : > { %4380 = vmatprep.subr.msk.bf16.mxu0 %vm4936_vm1, %v4282_v16 }
  0x77   : > { %4383 = vmatpush3.bf16.xpose.msk.msra.mxu0 %vm4936_vm1, %v4282_v16 }
  0x78   : > { %4386 = vmatprep.subr.msk.bf16.mxu0 %vm4936_vm1, %v4288_v19 }
  0x7f   : > { %4389 = vmatpush3.bf16.xpose.msk.msra.mxu0 %vm4936_vm1, %v4288_v19 }
  0x80   : > { %4392 = vmatprep.subr.msk.bf16.mxu0 %vm4936_vm1, %v4294_v22 }
  0x87   : > { %4395 = vmatpush3.bf16.xpose.msk.msra.mxu0 %vm4936_vm1, %v4294_v22 }
  0x88   : > { %4398 = vmatprep.subr.msk.bf16.mxu0 %vm4936_vm1, %v4300_v25 }
  0x8f   : > { %4401 = vmatpush3.bf16.xpose.msk.msra.mxu0 %vm4936_vm1, %v4300_v25  ;;  %vm2779_vm1 = vcmask 786112  }
  0x96   : > { %3963 = vmatmul.mubr.msk.f32.vlgmr.msra.gmra.mrb[8].mxu0 %vm6283_vm0, %v653_v34 }
  0x97   : > { %3965 = vmatprep.mubr.msk.f32.mxu0 %vm6283_vm0, %v654_v35 }
  0x9a   : > { %3966 = vmatmul.mubr.msk.f32.gmra.mrb[10].mxu0 %vm6283_vm0, %v655_v36 }
  0x9b   : > { %3968 = vmatprep.mubr.msk.f32.mxu0 %vm6283_vm0, %v656_v37 }
  0x9e   : > { %3969 = vmatmul.mubr.msk.f32.gmra.mrb[12].mxu0 %vm6283_vm0, %v657_v38 }
  0x9f   : > { %3971 = vmatprep.mubr.msk.f32.mxu0 %vm6283_vm0, %v658_v39 }
  0xa2   : > { %3972 = vmatmul.mubr.msk.f32.gmra.mrb[14].mxu0 %vm6283_vm0, %v659_v40  ;;  %vm2807_vm0 = vcmask 1048512  }
 0x129   : > { %v3876_v45 = vpop.f32.mrb[0].mxu0  ;;  %v5163_v6 = vpop.f32.mrb[0].mxu1 }
 0x12a   : > { %v442_v46 = vpop.f32.mrb[1].mxu0  ;;  %6286 = vst [vmem:[#allocation4_spill] sm:$0xff] %v5163_v6  ;;  %v5165_v7 = vpop.f32.mrb[1].mxu1 }
 0x12b   : > { %v4402_v47 = vpack.c.bf16 %v3876_v45, %v442_v46 }
 0x12d   : > { %4403 = vmatprep.subr.bf16.mxu1 %v4402_v47  ;;  %v3879_v50 = vpop.f32.mrb[2].mxu0  ;;  %v5172_v16 = vpop.f32.mrb[2].mxu1 }
 0x12e   : > { %4405 = vmatpush3.bf16.msra.mxu1 %v4402_v47  ;;  %v452_v51 = vpop.f32.mrb[3].mxu0  ;;  %6287 = vst [vmem:[#allocation5_spill] sm:$0xff] %v5172_v16  ;;  %v5174_v17 = vpop.f32.mrb[3].mxu1 }
 0x12f   : > { %v4406_v52 = vpack.c.bf16 %v3879_v50, %v452_v51 }
 0x131   : > { %v3882_v55 = vpop.f32.mrb[4].mxu0  ;;  %4407 = vmatprep.subr.bf16.mxu1 %v4406_v52  ;;  %v5177_v20 = vpop.f32.mrb[4].mxu1 }
 0x132   : > { %v462_v56 = vpop.f32.mrb[5].mxu0  ;;  %6288 = vst [vmem:[#allocation6_spill] sm:$0xff] %v5177_v20  ;;  %v5180_v23 = vpop.f32.mrb[5].mxu1 }
 0x133   : > { %v4410_v57 = vpack.c.bf16 %v3882_v55, %v462_v56  ;;  %6289 = vst [vmem:[#allocation7_spill] sm:$0xff] %v5180_v23 }
 0x135   : > { %4411 = vmatprep.subr.bf16.mxu0 %v4410_v57  ;;  %v3885_v58 = vpop.f32.mrb[6].mxu0  ;;  %v5182_v24 = vpop.f32.mrb[6].mxu1 }
 0x136   : > { %4413 = vmatpush3.bf16.msra.mxu0 %v4410_v57  ;;  %v472_v59 = vpop.f32.mrb[7].mxu0  ;;  %6290 = vst [vmem:[#allocation8_spill] sm:$0xff] %v5182_v24  ;;  %v5185_v27 = vpop.f32.mrb[7].mxu1 }
 0x137   : > { %v5160_v60 = vpack.c.bf16 %v3885_v58, %v472_v59  ;;  %6291 = vst [vmem:[#allocation9_spill] sm:$0xff] %v5185_v27 }
 0x169   : > { %v3964_v61 = vpop.f32.mrb[8].mxu0 }
 0x16a   : > { %v799_v62 = vpop.f32.mrb[9].mxu0 }
 0x16b   : > { %846 = vxpose.xlu0.b32.start [1/2] (short) %v799_v62, 128 }
 0x16d   : > { %v3967_v63 = vpop.f32.mrb[10].mxu0 }
 0x16e   : > { %v809_v0 = vpop.f32.mrb[11].mxu0 }
 0x16f   : > { %847 = vxpose.xlu0.b32.end [2/2] (short) %v3964_v61, 128  ;;  %1072 = vxpose.xlu1.b32.start [1/2] (short) %v809_v0, 128 }
 0x171   : > { %v3970_v1 = vpop.f32.mrb[12].mxu0 }
 0x172   : > { %v819_v2 = vpop.f32.mrb[13].mxu0 }
 0x173   : > { %1073 = vxpose.xlu1.b32.end [2/2] (short) %v3967_v63, 128 }
 0x175   : > { %v3973_v3 = vpop.f32.mrb[14].mxu0 }
 0x176   : > { %v829_v4 = vpop.f32.mrb[15].mxu0 }
 0x1a8   : > { %1297 = vxpose.xlu0.b32.start [1/2] (short) %v819_v2, 128 }
 0x1ac   : > { %1298 = vxpose.xlu0.b32.end [2/2] (short) %v3970_v1, 128  ;;  %1522 = vxpose.xlu1.b32.start [1/2] (short) %v829_v4, 128 }
 0x1b0   : > { %1523 = vxpose.xlu1.b32.end [2/2] (short) %v3973_v3, 128 }
 0x1eb   : > { %v862_v5 = vpop.trf.xlu0 }
 0x1ec   : > { %3978 = vmatprep.mubr.msk.f32.mxu1 %vm878_vm2, %v862_v5 }
 0x1ef   : > { %v863_v8 = vpop.trf.xlu0  ;;  %v1088_v9 = vpop.trf.xlu1 }
 0x1f0   : > { %3979 = vmatmul.mubr.msk.f32.vlgmr.msra.gmra.mrb[8].mxu1 %vm878_vm2, %v863_v8 }
 0x1f1   : > { %4409 = vmatpush3.bf16.msra.mxu1 %v4406_v52 }
 0x1f2   : > { %4415 = vmatprep.subr.bf16.mxu1 %v5160_v60 }
 0x1f3   : > { %v864_v10 = vpop.trf.xlu0  ;;  %v1089_v11 = vpop.trf.xlu1 }
 0x1f4   : > { %3981 = vmatprep.mubr.msk.f32.mxu1 %vm878_vm2, %v864_v10 }
 0x1f7   : > { %v865_v12 = vpop.trf.xlu0  ;;  %v1090_v13 = vpop.trf.xlu1 }
 0x1f8   : > { %3982 = vmatmul.mubr.msk.f32.gmra.mrb[10].mxu1 %vm878_vm2, %v865_v12 }
 0x1fb   : > { %v866_v14 = vpop.trf.xlu0  ;;  %v1091_v15 = vpop.trf.xlu1 }
 0x1fc   : > { %3984 = vmatprep.mubr.msk.f32.mxu1 %vm878_vm2, %v866_v14 }
 0x1ff   : > { %v867_v18 = vpop.trf.xlu0  ;;  %v1092_v19 = vpop.trf.xlu1 }
 0x200   : > { %3985 = vmatmul.mubr.msk.f32.gmra.mrb[12].mxu1 %vm878_vm2, %v867_v18 }
 0x203   : > { %v868_v21 = vpop.trf.xlu0  ;;  %v1093_v22 = vpop.trf.xlu1 }
 0x204   : > { %3987 = vmatprep.mubr.msk.f32.mxu1 %vm878_vm2, %v868_v21 }
 0x207   : > { %v869_v25 = vpop.trf.xlu0  ;;  %v1094_v26 = vpop.trf.xlu1 }
 0x208   : > { %3988 = vmatmul.mubr.msk.f32.gmra.mrb[14].mxu1 %vm878_vm2, %v869_v25 }
 0x20b   : > { %v870_v28 = vpop.trf.xlu0  ;;  %v1095_v29 = vpop.trf.xlu1 }
 0x20c   : > { %3990 = vmatprep.mubr.msk.f32.mxu1 %vm878_vm2, %v870_v28 }
 0x20f   : > { %v871_v30 = vpop.trf.xlu0  ;;  %v1096_v31 = vpop.trf.xlu1 }
 0x210   : > { %3991 = vmatmul.mubr.msk.f32.gmra.mrb[16].mxu1 %vm878_vm2, %v871_v30 }
 0x213   : > { %v872_v32 = vpop.trf.xlu0  ;;  %v1097_v33 = vpop.trf.xlu1 }
 0x214   : > { %3993 = vmatprep.mubr.msk.f32.mxu1 %vm878_vm2, %v872_v32 }
 0x217   : > { %v873_v34 = vpop.trf.xlu0  ;;  %v1098_v35 = vpop.trf.xlu1 }
 0x218   : > { %3994 = vmatmul.mubr.msk.f32.gmra.mrb[18].mxu1 %vm878_vm2, %v873_v34 }
 0x21b   : > { %v874_v36 = vpop.trf.xlu0  ;;  %v1099_v37 = vpop.trf.xlu1 }
 0x21c   : > { %3996 = vmatprep.mubr.msk.f32.mxu1 %vm878_vm2, %v874_v36 }
 0x21f   : > { %v875_v38 = vpop.trf.xlu0  ;;  %v1100_v39 = vpop.trf.xlu1 }
 0x220   : > { %3997 = vmatmul.mubr.msk.f32.gmra.mrb[20].mxu1 %vm878_vm2, %v875_v38 }
 0x223   : > { %v876_v40 = vpop.trf.xlu0  ;;  %v1101_v41 = vpop.trf.xlu1 }
 0x224   : > { %3999 = vmatprep.mubr.msk.f32.mxu1 %vm878_vm2, %v876_v40 }
 0x227   : > { %v877_v42 = vpop.trf.xlu0  ;;  %v1102_v43 = vpop.trf.xlu1 }
 0x228   : > { %4000 = vmatmul.mubr.msk.f32.gmra.mrb[22].mxu1 %vm878_vm2, %v877_v42 }
 0x229   : > { %4006 = vmatprep.mubr.msk.f32.mxu1 %vm878_vm2, %v1088_v9 }
 0x22b   : > { %v1103_v44 = vpop.trf.xlu1  ;;  %v1313_v45 = vpop.trf.xlu0 }
 0x22c   : > { %4007 = vmatmul.mubr.msk.f32.vlgmr.msra.gmra.mrb[24].mxu1 %vm878_vm2, %v1089_v11  ;;  %4034 = vmatprep.mubr.msk.f32.mxu0 %vm878_vm2, %v1313_v45 }
 0x22d   : > { %4417 = vmatpush3.bf16.msra.mxu1 %v5160_v60  ;;  %4009 = vmatprep.mubr.msk.f32.mxu1 %vm878_vm2, %v1090_v13 }
 0x22f   : > { %v1314_v46 = vpop.trf.xlu0  ;;  %v1538_v47 = vpop.trf.xlu1 }
 0x230   : > { %4010 = vmatmul.mubr.msk.f32.gmra.mrb[26].mxu1 %vm878_vm2, %v1091_v15  ;;  %4035 = vmatmul.mubr.msk.f32.vlgmr.msra.gmra.mrb[16].mxu0 %vm878_vm2, %v1314_v46  ;;  %v6267_v15 = vlaneseq }
 0x231   : > { %4012 = vmatprep.mubr.msk.f32.mxu1 %vm878_vm2, %v1092_v19 }
 0x232   : > { %v5247_v18 = vand.u32 127, %v6267_v15 }
 0x233   : > { %v1315_v48 = vpop.trf.xlu0  ;;  %v1539_v49 = vpop.trf.xlu1 }
 0x234   : > { %4013 = vmatmul.mubr.msk.f32.gmra.mrb[28].mxu1 %vm878_vm2, %v1093_v22  ;;  %4037 = vmatprep.mubr.msk.f32.mxu0 %vm878_vm2, %v1315_v48  ;;  %6292 = vst [vmem:[#allocation10_spill] sm:$0xff] %v5247_v18  ;;  %vm1749_vm3 = vcmp.lt.s32.totalorder %v5247_v18, 8 }
 0x235   : > { %4015 = vmatprep.mubr.msk.f32.mxu1 %vm878_vm2, %v1094_v26 }
 0x237   : > { %v1316_v50 = vpop.trf.xlu0  ;;  %v1540_v51 = vpop.trf.xlu1 }
 0x238   : > { %4016 = vmatmul.mubr.msk.f32.gmra.mrb[30].mxu1 %vm878_vm2, %v1095_v29  ;;  %4038 = vmatmul.mubr.msk.f32.gmra.mrb[18].mxu0 %vm878_vm2, %v1316_v50 }
 0x239   : > { %4018 = vmatprep.mubr.msk.f32.mxu1 %vm878_vm2, %v1096_v31 }
 0x23b   : > { %v1317_v52 = vpop.trf.xlu0  ;;  %v1541_v53 = vpop.trf.xlu1 }
 0x23c   : > { %4019 = vmatmul.mubr.msk.f32.gmra.mrb[32].mxu1 %vm878_vm2, %v1097_v33  ;;  %4040 = vmatprep.mubr.msk.f32.mxu0 %vm878_vm2, %v1317_v52 }
 0x23d   : > { %4021 = vmatprep.mubr.msk.f32.mxu1 %vm878_vm2, %v1098_v35 }
 0x23f   : > { %v1318_v54 = vpop.trf.xlu0  ;;  %v1542_v55 = vpop.trf.xlu1 }
 0x240   : > { %4022 = vmatmul.mubr.msk.f32.gmra.mrb[34].mxu1 %vm878_vm2, %v1099_v37  ;;  %4041 = vmatmul.mubr.msk.f32.gmra.mrb[20].mxu0 %vm878_vm2, %v1318_v54 }
 0x241   : > { %4024 = vmatprep.mubr.msk.f32.mxu1 %vm878_vm2, %v1100_v39 }
 0x243   : > { %v1319_v56 = vpop.trf.xlu0  ;;  %v1543_v57 = vpop.trf.xlu1 }
 0x244   : > { %4025 = vmatmul.mubr.msk.f32.gmra.mrb[36].mxu1 %vm878_vm2, %v1101_v41  ;;  %4043 = vmatprep.mubr.msk.f32.mxu0 %vm878_vm2, %v1319_v56 }
 0x245   : > { %4027 = vmatprep.mubr.msk.f32.mxu1 %vm878_vm2, %v1102_v43 }
 0x247   : > { %v1320_v58 = vpop.trf.xlu0  ;;  %v1544_v59 = vpop.trf.xlu1 }
 0x248   : > { %4028 = vmatmul.mubr.msk.f32.gmra.mrb[38].mxu1 %vm878_vm2, %v1103_v44  ;;  %4044 = vmatmul.mubr.msk.f32.gmra.mrb[22].mxu0 %vm878_vm2, %v1320_v58 }
 0x249   : > { %4062 = vmatprep.mubr.msk.f32.mxu1 %vm878_vm2, %v1538_v47 }
 0x24b   : > { %v1321_v60 = vpop.trf.xlu0  ;;  %v1545_v61 = vpop.trf.xlu1 }
 0x24c   : > { %4063 = vmatmul.mubr.msk.f32.vlgmr.msra.gmra.mrb[40].mxu1 %vm878_vm2, %v1539_v49  ;;  %4046 = vmatprep.mubr.msk.f32.mxu0 %vm878_vm2, %v1321_v60 }
 0x24d   : > { %4065 = vmatprep.mubr.msk.f32.mxu1 %vm878_vm2, %v1540_v51 }
 0x24f   : > { %v1322_v62 = vpop.trf.xlu0  ;;  %v1546_v63 = vpop.trf.xlu1 }
 0x250   : > { %4066 = vmatmul.mubr.msk.f32.gmra.mrb[42].mxu1 %vm878_vm2, %v1541_v53  ;;  %4047 = vmatmul.mubr.msk.f32.gmra.mrb[24].mxu0 %vm878_vm2, %v1322_v62 }
 0x251   : > { %4068 = vmatprep.mubr.msk.f32.mxu1 %vm878_vm2, %v1542_v55 }
 0x253   : > { %v1323_v0 = vpop.trf.xlu0  ;;  %v1547_v1 = vpop.trf.xlu1 }
 0x254   : > { %4069 = vmatmul.mubr.msk.f32.gmra.mrb[44].mxu1 %vm878_vm2, %v1543_v57  ;;  %4049 = vmatprep.mubr.msk.f32.mxu0 %vm878_vm2, %v1323_v0 }
 0x255   : > { %4071 = vmatprep.mubr.msk.f32.mxu1 %vm878_vm2, %v1544_v59 }
 0x257   : > { %v1324_v2 = vpop.trf.xlu0  ;;  %v1548_v3 = vpop.trf.xlu1 }
 0x258   : > { %4072 = vmatmul.mubr.msk.f32.gmra.mrb[46].mxu1 %vm878_vm2, %v1545_v61  ;;  %4050 = vmatmul.mubr.msk.f32.gmra.mrb[26].mxu0 %vm878_vm2, %v1324_v2 }
 0x259   : > { %4074 = vmatprep.mubr.msk.f32.mxu1 %vm878_vm2, %v1546_v63 }
 0x25b   : > { %v1325_v4 = vpop.trf.xlu0  ;;  %v1549_v5 = vpop.trf.xlu1 }
 0x25c   : > { %4075 = vmatmul.mubr.msk.f32.gmra.mrb[48].mxu1 %vm878_vm2, %v1547_v1  ;;  %4052 = vmatprep.mubr.msk.f32.mxu0 %vm878_vm2, %v1325_v4 }
 0x25d   : > { %4077 = vmatprep.mubr.msk.f32.mxu1 %vm878_vm2, %v1548_v3 }
 0x25f   : > { %v1326_v8 = vpop.trf.xlu0  ;;  %v1550_v9 = vpop.trf.xlu1 }
 0x260   : > { %4078 = vmatmul.mubr.msk.f32.gmra.mrb[50].mxu1 %vm878_vm2, %v1549_v5  ;;  %4053 = vmatmul.mubr.msk.f32.gmra.mrb[28].mxu0 %vm878_vm2, %v1326_v8 }
 0x261   : > { %4080 = vmatprep.mubr.msk.f32.mxu1 %vm878_vm2, %v1550_v9 }
 0x263   : > { %v1327_v10 = vpop.trf.xlu0  ;;  %v1551_v11 = vpop.trf.xlu1 }
 0x264   : > { %4081 = vmatmul.mubr.msk.f32.gmra.mrb[52].mxu1 %vm878_vm2, %v1551_v11  ;;  %4055 = vmatprep.mubr.msk.f32.mxu0 %vm878_vm2, %v1327_v10 }
 0x267   : > { %v1328_v12 = vpop.trf.xlu0  ;;  %v1552_v13 = vpop.trf.xlu1 }
 0x268   : > { %4056 = vmatmul.mubr.msk.f32.gmra.mrb[30].mxu0 %vm878_vm2, %v1328_v12  ;;  %4083 = vmatprep.mubr.msk.f32.mxu1 %vm878_vm2, %v1552_v13 }
 0x269   : > { %4118 = vmatprep.mubr.f32.mxu0 %v5165_v7 }
 0x26b   : > { %v1553_v14 = vpop.trf.xlu1 }
 0x26c   : > { %4084 = vmatmul.mubr.msk.f32.gmra.mrb[54].mxu1 %vm878_vm2, %v1553_v14  ;;  %vm2786_vm2 = vcmask 851712  }
 0x26d   : > { %4153 = vmatprep.mubr.f32.mxu1 %v5174_v17 }
 0x2c3   : > { %v3980_v19 = vpop.f32.mrb[8].mxu1 }
 0x2c4   : > { %v993_v21 = vpop.f32.mrb[9].mxu1  ;;  %v5252_v22 = vsel %vm1749_vm3, %v3980_v19, -inf }
 0x2c5   : > { %1818 = vmax.xlane.f32.xlu1 %v5252_v22  ;;  %v5257_v7 = vsel %vm1749_vm3, %v993_v21, -inf }
 0x2c6   : > { %1816 = vmax.xlane.f32.xlu0 %v5257_v7 }
 0x2cb   : > { %v3983_v17 = vpop.f32.mrb[10].mxu1 }
 0x2cc   : > { %v1003_v25 = vpop.f32.mrb[11].mxu1  ;;  %v5300_v50 = vsel %vm1749_vm3, %v3983_v17, -inf }
 0x2cd   : > { %v5262_v26 = vsel %vm1749_vm3, %v1003_v25, -inf }
 0x2ce   : > { %1820 = vmax.xlane.f32.xlu0 %v5262_v26 }
 0x2d3   : > { %v3986_v28 = vpop.f32.mrb[12].mxu1 }
 0x2d4   : > { %v1013_v29 = vpop.f32.mrb[13].mxu1  ;;  %v5324_v60 = vsel %vm1749_vm3, %v3986_v28, -inf }
 0x2d5   : > { %v5305_v52 = vsel %vm1749_vm3, %v1013_v29, -inf }
 0x2db   : > { %v3989_v30 = vpop.f32.mrb[14].mxu1 }
 0x2dc   : > { %v1023_v31 = vpop.f32.mrb[15].mxu1  ;;  %v5348_v8 = vsel %vm1749_vm3, %v3989_v30, -inf }
 0x2dd   : > { %v5329_v62 = vsel %vm1749_vm3, %v1023_v31, -inf }
 0x2e3   : > { %v5265_v32 = vpop.f32.mrb[16].mxu1 }
 0x2e4   : > { %v1033_v33 = vpop.f32.mrb[17].mxu1  ;;  %v5373_v25 = vsel %vm1749_vm3, %v5265_v32, -inf }
 0x2e5   : > { %v5353_v10 = vsel %vm1749_vm3, %v1033_v33, -inf }
 0x2eb   : > { %v5267_v34 = vpop.f32.mrb[18].mxu1 }
 0x2ec   : > { %v5269_v35 = vpop.f32.mrb[19].mxu1 }
 0x2ed   : > { %v5379_v29 = vsel %vm1749_vm3, %v5269_v35, -inf }
 0x2f3   : > { %v5271_v36 = vpop.f32.mrb[20].mxu1 }
 0x2f4   : > { %v5273_v37 = vpop.f32.mrb[21].mxu1 }
 0x2fb   : > { %v5275_v38 = vpop.f32.mrb[22].mxu1 }
 0x2fc   : > { %v5277_v39 = vpop.f32.mrb[23].mxu1 }
 0x2ff   : > { %v4008_v40 = vpop.f32.mrb[24].mxu1 }
 0x300   : > { %v1218_v41 = vpop.f32.mrb[25].mxu1  ;;  %v5281_v42 = vsel %vm1749_vm3, %v4008_v40, -inf }
 0x301   : > { %1850 = vmax.xlane.f32.xlu1 %v5281_v42  ;;  %v5288_v46 = vsel %vm1749_vm3, %v1218_v41, -inf }
 0x303   : > { %v4011_v43 = vpop.f32.mrb[26].mxu1  ;;  %v5284_v44 = vpop.f32.mrb[16].mxu0 }
 0x304   : > { %v1228_v45 = vpop.f32.mrb[27].mxu1  ;;  %v5290_v47 = vpop.f32.mrb[17].mxu0  ;;  %v5310_v53 = vsel %vm1749_vm3, %v4011_v43, -inf  ;;  %v5399_v43 = vsel %vm1749_vm3, %v5267_v34, -inf }
 0x305   : > { %1848 = vmax.xlane.f32.xlu1 %v5288_v46  ;;  %v5295_v48 = vsel %vm1749_vm3, %v1228_v45, -inf }
 0x306   : > { %1852 = vmax.xlane.f32.xlu0 %v5295_v48 }
 0x307   : > { %v4014_v49 = vpop.f32.mrb[28].mxu1 }
 0x308   : > { %v1238_v51 = vpop.f32.mrb[29].mxu1  ;;  %v5334_v63 = vsel %vm1749_vm3, %v4014_v49, -inf  ;;  %v5405_v49 = vsel %vm1749_vm3, %v5273_v37, -inf }
 0x309   : > { %1822 = vmax.xlane.f32.xlu1 %v5300_v50  ;;  %v5314_v54 = vsel %vm1749_vm3, %v1238_v51, -inf }
 0x30a   : > { %1824 = vmax.xlane.f32.xlu0 %v5305_v52 }
 0x30b   : > { %v4017_v55 = vpop.f32.mrb[30].mxu1  ;;  %v5316_v56 = vpop.f32.mrb[18].mxu0 }
 0x30c   : > { %v1248_v57 = vpop.f32.mrb[31].mxu1  ;;  %v5318_v58 = vpop.f32.mrb[19].mxu0  ;;  %v5358_v11 = vsel %vm1749_vm3, %v4017_v55, -inf }
 0x30d   : > { %1854 = vmax.xlane.f32.xlu1 %v5310_v53  ;;  %v5338_v0 = vsel %vm1749_vm3, %v1248_v57, -inf }
 0x30e   : > { %1856 = vmax.xlane.f32.xlu0 %v5314_v54 }
 0x30f   : > { %v4020_v59 = vpop.f32.mrb[32].mxu1 }
 0x310   : > { %v1258_v61 = vpop.f32.mrb[33].mxu1  ;;  %v5384_v30 = vsel %vm1749_vm3, %v4020_v59, -inf }
 0x311   : > { %1826 = vmax.xlane.f32.xlu1 %v5324_v60  ;;  %v5362_v12 = vsel %vm1749_vm3, %v1258_v61, -inf }
 0x312   : > { %1828 = vmax.xlane.f32.xlu0 %v5329_v62 }
 0x313   : > { %v4023_v1 = vpop.f32.mrb[34].mxu1  ;;  %v5340_v2 = vpop.f32.mrb[20].mxu0 }
 0x314   : > { %v1268_v3 = vpop.f32.mrb[35].mxu1  ;;  %v5342_v4 = vpop.f32.mrb[21].mxu0  ;;  %v5410_v51 = vsel %vm1749_vm3, %v4023_v1, -inf  ;;  %v5429_v1 = vsel %vm1749_vm3, %v5271_v36, -inf }
 0x315   : > { %1858 = vmax.xlane.f32.xlu1 %v5334_v63  ;;  %v5388_v31 = vsel %vm1749_vm3, %v1268_v3, -inf }
 0x316   : > { %1860 = vmax.xlane.f32.xlu0 %v5338_v0 }
 0x317   : > { %v4026_v5 = vpop.f32.mrb[36].mxu1 }
 0x318   : > { %v1278_v9 = vpop.f32.mrb[37].mxu1  ;;  %v5442_v15 = vsel %vm1749_vm3, %v4026_v5, -inf }
 0x319   : > { %1830 = vmax.xlane.f32.xlu1 %v5348_v8  ;;  %v5414_v55 = vsel %vm1749_vm3, %v1278_v9, -inf  ;;  %v5437_v9 = vsel %vm1749_vm3, %v5277_v39, -inf  ;;  %6293 = vst [vmem:[#allocation11_spill] sm:$0xff] %v5442_v15  ;;  %v5461_v39 = vsel %vm1749_vm3, %v5290_v47, -inf }
 0x31a   : > { %1832 = vmax.xlane.f32.xlu0 %v5353_v10  ;;  %6295 = vst [vmem:[#allocation13_spill] sm:$0xff] %v5461_v39 }
 0x31b   : > { %v4029_v13 = vpop.f32.mrb[38].mxu1  ;;  %v5364_v14 = vpop.f32.mrb[22].mxu0 }
 0x31c   : > { %v1288_v19 = vpop.f32.mrb[39].mxu1  ;;  %v5366_v21 = vpop.f32.mrb[23].mxu0  ;;  %v5476_v6 = vsel %vm1749_vm3, %v4029_v13, -inf  ;;  %v5496_v13 = vsel %vm1749_vm3, %v5318_v58, -inf  ;;  %v5516_v58 = vsel %vm1749_vm3, %v5316_v56, -inf  ;;  %v5538_v56 = vsel %vm1749_vm3, %v5340_v2, -inf }
 0x31d   : > { %1862 = vmax.xlane.f32.xlu1 %v5358_v11  ;;  %v5446_v24 = vsel %vm1749_vm3, %v1288_v19, -inf  ;;  %v5468_v19 = vsel %vm1749_vm3, %v5275_v38, -inf  ;;  %6296 = vst [vmem:[#allocation14_spill] sm:$0xff] %v5476_v6  ;;  %v5490_v38 = vsel %vm1749_vm3, %v5284_v44, -inf  ;;  %6301 = vst [vmem:[#allocation19_spill] sm:$0xff] %v5538_v56 }
 0x31e   : > { %1864 = vmax.xlane.f32.xlu0 %v5362_v12  ;;  %6294 = vst [vmem:[#allocation12_spill] sm:$0xff] %v5446_v24 }
 0x31f   : > { %v4064_v17 = vpop.f32.mrb[40].mxu1 }
 0x320   : > { %v1668_v28 = vpop.f32.mrb[41].mxu1 }
 0x321   : > { %1834 = vmax.xlane.f32.xlu1 %v5373_v25  ;;  %v5480_v47 = vsel %vm1749_vm3, %v1668_v28, -inf }
 0x322   : > { %1836 = vmax.xlane.f32.xlu0 %v5379_v29 }
 0x323   : > { %v4067_v32 = vpop.f32.mrb[42].mxu1  ;;  %v5390_v33 = vpop.f32.mrb[24].mxu0 }
 0x324   : > { %v1678_v40 = vpop.f32.mrb[43].mxu1  ;;  %v5392_v41 = vpop.f32.mrb[25].mxu0 }
 0x325   : > { %1866 = vmax.xlane.f32.xlu1 %v5384_v30  ;;  %v5510_v44 = vsel %vm1749_vm3, %v1678_v40, -inf  ;;  %v5527_v40 = vsel %vm1749_vm3, %v4067_v32, -inf }
 0x326   : > { %1868 = vmax.xlane.f32.xlu0 %v5388_v31  ;;  %6299 = vst [vmem:[#allocation17_spill] sm:$0xff] %v5527_v40 }
 0x327   : > { %v4070_v35 = vpop.f32.mrb[44].mxu1 }
 0x328   : > { %v1688_v45 = vpop.f32.mrb[45].mxu1  ;;  %v5549_v32 = vsel %vm1749_vm3, %v4070_v35, -inf  ;;  %v5562_v35 = vsel %vm1749_vm3, %v5364_v14, -inf }
 0x329   : > { %1838 = vmax.xlane.f32.xlu1 %v5399_v43 }
 0x32a   : > { %1840 = vmax.xlane.f32.xlu0 %v5405_v49 }
 0x32b   : > { %v5416_v34 = vpop.f32.mrb[46].mxu1  ;;  %v5418_v57 = vpop.f32.mrb[26].mxu0 }
 0x32c   : > { %v1698_v59 = vpop.f32.mrb[47].mxu1  ;;  %v5420_v61 = vpop.f32.mrb[27].mxu0 }
 0x32d   : > { %1870 = vmax.xlane.f32.xlu1 %v5410_v51 }
 0x32e   : > { %1872 = vmax.xlane.f32.xlu0 %v5414_v55 }
 0x32f   : > { %v5424_v37 = vpop.f32.mrb[48].mxu1 }
 0x330   : > { %v5431_v3 = vpop.f32.mrb[49].mxu1 }
 0x331   : > { %1842 = vmax.xlane.f32.xlu1 %v5429_v1  ;;  %v5580_v14 = vsel %vm1749_vm3, %v5431_v3, -inf  ;;  %v5598_v3 = vsel %vm1749_vm3, %v5424_v37, -inf }
 0x332   : > { %1844 = vmax.xlane.f32.xlu0 %v5437_v9 }
 0x333   : > { %v5448_v36 = vpop.f32.mrb[50].mxu1  ;;  %v5450_v20 = vpop.f32.mrb[28].mxu0 }
 0x334   : > { %v5452_v27 = vpop.f32.mrb[51].mxu1  ;;  %v5454_v16 = vpop.f32.mrb[29].mxu0 }
 0x335   : > { %1874 = vmax.xlane.f32.xlu1 %v5442_v15  ;;  %v5616_v37 = vsel %vm1749_vm3, %v5454_v16, -inf  ;;  %v5635_v16 = vsel %vm1749_vm3, %v5450_v20, -inf }
 0x336   : > { %1876 = vmax.xlane.f32.xlu0 %v5446_v24 }
 0x337   : > { %v5463_v5 = vpop.f32.mrb[52].mxu1 }
 0x338   : > { %v5470_v23 = vpop.f32.mrb[53].mxu1 }
 0x339   : > { %1846 = vmax.xlane.f32.xlu1 %v5468_v19 }
 0x33a   : > { %1880 = vmax.xlane.f32.xlu0 %v5461_v39 }
 0x33b   : > { %v5482_v24 = vpop.f32.mrb[30].mxu0 }
 0x33c   : > { %v5484_v15 = vpop.f32.mrb[31].mxu0 }
 0x33d   : > { %1878 = vmax.xlane.f32.xlu1 %v5476_v6  ;;  %v5505_v6 = vsel %vm1749_vm3, %v4064_v17, -inf  ;;  %v5522_v17 = vsel %vm1749_vm3, %v5342_v4, -inf  ;;  %v5544_v4 = vsel %vm1749_vm3, %v5366_v21, -inf }
 0x33e   : > { %1912 = vmax.xlane.f32.xlu0 %v5480_v47  ;;  %6297 = vst [vmem:[#allocation15_spill] sm:$0xff] %v5505_v6  ;;  %6298 = vst [vmem:[#allocation16_spill] sm:$0xff] %v5522_v17 }
 0x33f   : > { %v5498_v28 = vpop.f32.mrb[54].mxu1 }
 0x340   : > { %v5500_v39 = vpop.f32.mrb[55].mxu1 }
 0x341   : > { %1882 = vmax.xlane.f32.xlu1 %v5490_v38  ;;  %v5653_v20 = vsel %vm1749_vm3, %v5500_v39, -inf }
 0x342   : > { %1884 = vmax.xlane.f32.xlu0 %v5496_v13  ;;  %6303 = vst [vmem:[#allocation21_spill] sm:$0xff] %v5653_v20 }
 0x345   : > { %1914 = vmax.xlane.f32.xlu1 %v5505_v6  ;;  %v5532_v6 = vsel %vm1749_vm3, %v1688_v45, -inf }
 0x346   : > { %1916 = vmax.xlane.f32.xlu0 %v5510_v44  ;;  %6300 = vst [vmem:[#allocation18_spill] sm:$0xff] %v5532_v6 }
 0x349   : > { %1886 = vmax.xlane.f32.xlu1 %v5516_v58 }
 0x34a   : > { %1888 = vmax.xlane.f32.xlu0 %v5522_v17 }
 0x34d   : > { %1918 = vmax.xlane.f32.xlu1 %v5527_v40 }
 0x34e   : > { %1920 = vmax.xlane.f32.xlu0 %v5532_v6  ;;  %v5555_v6 = vsel %vm1749_vm3, %v1698_v59, -inf }
 0x351   : > { %1890 = vmax.xlane.f32.xlu1 %v5538_v56 }
 0x352   : > { %v1819_v45 = vpop.xlane.xlu1 %1818  ;;  %1892 = vmax.xlane.f32.xlu0 %v5544_v4 }
 0x353   : > { %v1945_v40 = vsub.f32 %v5252_v22, %v1819_v45  ;;  %v1817_v2 = vpop.xlane.xlu0 %1816  ;;  %v5568_v22 = vsel %vm1749_vm3, %v5392_v41, -inf  ;;  %v5586_v41 = vsel %vm1749_vm3, %v5390_v33, -inf  ;;  %v5604_v33 = vsel %vm1749_vm3, %v5452_v27, -inf }
 0x354   : > { %v1944_v17 = vsub.f32 %v5257_v7, %v1817_v2  ;;  %v5574_v7 = vsel %vm1749_vm3, %v5416_v34, -inf  ;;  %v5592_v34 = vsel %vm1749_vm3, %v5420_v61, -inf  ;;  %v5610_v61 = vsel %vm1749_vm3, %v5418_v57, -inf }
 0x355   : > { %v2010_v21 = vmul.f32 1.442695, %v1945_v40  ;;  %1922 = vmax.xlane.f32.xlu1 %v5549_v32  ;;  %v5622_v27 = vsel %vm1749_vm3, %v5448_v36, -inf  ;;  %v5629_v45 = vsel %vm1749_vm3, %v5470_v23, -inf  ;;  %v5641_v2 = vsel %vm1749_vm3, %v5484_v15, -inf }
 0x356   : > { %v2008_v56 = vmul.f32 1.442695, %v1944_v17  ;;  %1924 = vmax.xlane.f32.xlu0 %v5555_v6  ;;  %v5647_v23 = vsel %vm1749_vm3, %v5463_v5, -inf  ;;  %v5659_v15 = vsel %vm1749_vm3, %v5482_v24, -inf }
 0x357   : > { %4587 = vpow2.f32 %v2010_v21  ;;  %6302 = vst [vmem:[#allocation20_spill] sm:$0xff] %v5647_v23  ;;  %6304 = vst [vmem:[#allocation22_spill] sm:$0xff] %v5659_v15 }
 0x358   : > { %4589 = vpow2.f32 %v2008_v56 }
 0x359   : > { %1894 = vmax.xlane.f32.xlu1 %v5562_v35 }
 0x35a   : > { %1896 = vmax.xlane.f32.xlu0 %v5568_v22 }
 0x35b   : > { %v1821_v56 = vpop.xlane.xlu0 %1820 }
 0x35c   : > { %v1946_v57 = vsub.f32 %v5262_v26, %v1821_v56  ;;  %v5666_v26 = vsel %vm1749_vm3, %v5498_v28, -inf  ;;  %vm2793_vm3 = vcmask 917312  }
 0x35d   : > { %1926 = vmax.xlane.f32.xlu1 %v5574_v7  ;;  %6305 = vst [vmem:[#allocation23_spill] sm:$0xff] %v5666_v26 }
 0x35e   : > { %1928 = vmax.xlane.f32.xlu0 %v5580_v14  ;;  %v2012_v36 = vmul.f32 1.442695, %v1946_v57 }
 0x360   : > { %4591 = vpow2.f32 %v2012_v36 }
 0x361   : > { %v4588_v59 = vpop.eup %4587  ;;  %1898 = vmax.xlane.f32.xlu1 %v5586_v41 }
 0x362   : > { %v4590_v17 = vpop.eup %4589  ;;  %1900 = vmax.xlane.f32.xlu0 %v5592_v34 }
 0x363   : > { %v4418_v40 = vpack.c.bf16 %v4588_v59, %v4590_v17 }
 0x365   : > { %4419 = vmatprep.subr.bf16.mxu0 %v4418_v40  ;;  %1930 = vmax.xlane.f32.xlu1 %v5598_v3 }
 0x366   : > { %4421 = vmatpush3.bf16.xpose.msra.mxu0 %v4418_v40  ;;  %1932 = vmax.xlane.f32.xlu0 %v5604_v33 }
 0x369   : > { %1902 = vmax.xlane.f32.xlu1 %v5610_v61 }
 0x36a   : > { %1904 = vmax.xlane.f32.xlu0 %v5616_v37  ;;  %v4592_v5 = vpop.eup %4591 }
 0x36d   : > { %1934 = vmax.xlane.f32.xlu1 %v5622_v27 }
 0x36e   : > { %1936 = vmax.xlane.f32.xlu0 %v5629_v45 }
 0x371   : > { %1906 = vmax.xlane.f32.xlu1 %v5635_v16 }
 0x372   : > { %1908 = vmax.xlane.f32.xlu0 %v5641_v2 }
 0x375   : > { %1938 = vmax.xlane.f32.xlu1 %v5647_v23 }
 0x376   : > { %1940 = vmax.xlane.f32.xlu0 %v5653_v20 }
 0x379   : > { %1910 = vmax.xlane.f32.xlu1 %v5659_v15 }
 0x37a   : > { %2136 = vadd.xlane.f32.xlu0 %v4590_v17 }
 0x37d   : > { %1942 = vmax.xlane.f32.xlu1 %v5666_v26 }
 0x37e   : > { %2140 = vadd.xlane.f32.xlu0 %v4592_v5 }
 0x381   : > { %2138 = vadd.xlane.f32.xlu1 %v4588_v59 }
 0x38e   : > { %v1851_v39 = vpop.xlane.xlu1 %1850 }
 0x38f   : > { %v1961_v21 = vsub.f32 %v5281_v42, %v1851_v39 }
 0x391   : > { %v2042_v24 = vmul.f32 1.442695, %v1961_v21 }
 0x392   : > { %v1849_v40 = vpop.xlane.xlu1 %1848 }
 0x393   : > { %v1960_v56 = vsub.f32 %v5288_v46, %v1849_v40  ;;  %v1853_v57 = vpop.xlane.xlu0 %1852  ;;  %4593 = vpow2.f32 %v2042_v24 }
 0x394   : > { %v1962_v18 = vsub.f32 %v5295_v48, %v1853_v57 }
 0x395   : > { %v2040_v36 = vmul.f32 1.442695, %v1960_v56 }
 0x396   : > { %v1823_v28 = vpop.xlane.xlu1 %1822  ;;  %v2044_v20 = vmul.f32 1.442695, %v1962_v18 }
 0x397   : > { %4595 = vpow2.f32 %v2040_v36  ;;  %v1947_v17 = vsub.f32 %v5300_v50, %v1823_v28  ;;  %v1825_v15 = vpop.xlane.xlu0 %1824 }
 0x398   : > { %v1948_v59 = vsub.f32 %v5305_v52, %v1825_v15 }
 0x399   : > { %v2014_v26 = vmul.f32 1.442695, %v1947_v17 }
 0x39a   : > { %v1855_v23 = vpop.xlane.xlu1 %1854  ;;  %v2016_v21 = vmul.f32 1.442695, %v1948_v59 }
 0x39b   : > { %4597 = vpow2.f32 %v2014_v26  ;;  %v1963_v42 = vsub.f32 %v5310_v53, %v1855_v23  ;;  %v1857_v39 = vpop.xlane.xlu0 %1856 }
 0x39c   : > { %4599 = vpow2.f32 %v2044_v20  ;;  %v1964_v24 = vsub.f32 %v5314_v54, %v1857_v39 }
 0x39d   : > { %v2046_v46 = vmul.f32 1.442695, %v1963_v42  ;;  %v5677_v56 = vpop.eup %4593 }
 0x39e   : > { %v1827_v48 = vpop.xlane.xlu1 %1826  ;;  %v2048_v15 = vmul.f32 1.442695, %v1964_v24 }
 0x39f   : > { %4601 = vpow2.f32 %v2046_v46  ;;  %v1949_v40 = vsub.f32 %v5324_v60, %v1827_v48  ;;  %v1829_v50 = vpop.xlane.xlu0 %1828 }
 0x3a0   : > { %4603 = vpow2.f32 %v2016_v21  ;;  %v1950_v53 = vsub.f32 %v5329_v62, %v1829_v50 }
 0x3a1   : > { %v5679_v18 = vpop.eup %4595  ;;  %v2018_v52 = vmul.f32 1.442695, %v1949_v40 }
 0x3a2   : > { %v1859_v23 = vpop.xlane.xlu1 %1858  ;;  %v4450_v20 = vpack.c.bf16 %v5677_v56, %v5679_v18  ;;  %v2020_v36 = vmul.f32 1.442695, %v1950_v53 }
 0x3a3   : > { %4605 = vpow2.f32 %v2018_v52  ;;  %v1965_v54 = vsub.f32 %v5334_v63, %v1859_v23  ;;  %v1861_v26 = vpop.xlane.xlu0 %1860 }
 0x3a4   : > { %4451 = vmatprep.subr.bf16.mxu1 %v4450_v20  ;;  %4607 = vpow2.f32 %v2048_v15  ;;  %v1966_v28 = vsub.f32 %v5338_v0, %v1861_v26 }
 0x3a5   : > { %v4598_v60 = vpop.eup %4597  ;;  %v2050_v57 = vmul.f32 1.442695, %v1965_v54  ;;  %4453 = vmatpush3.bf16.xpose.msra.mxu1 %v4450_v20 }
 0x3a6   : > { %v1831_v17 = vpop.xlane.xlu1 %1830  ;;  %2142 = vadd.xlane.f32.xlu1 %v4598_v60  ;;  %v4422_v59 = vpack.c.bf16 %v4598_v60, %v4592_v5  ;;  %v5687_v39 = vpop.eup %4599  ;;  %v2052_v21 = vmul.f32 1.442695, %v1966_v28 }
 0x3a7   : > { %4609 = vpow2.f32 %v2050_v57  ;;  %v1951_v62 = vsub.f32 %v5348_v8, %v1831_v17  ;;  %v1833_v42 = vpop.xlane.xlu0 %1832 }
 0x3a8   : > { %4423 = vmatprep.subr.bf16.mxu0 %v4422_v59  ;;  %4611 = vpow2.f32 %v2020_v36  ;;  %v1952_v24 = vsub.f32 %v5353_v10, %v1833_v42 }
 0x3a9   : > { %v5689_v63 = vpop.eup %4601  ;;  %v2022_v46 = vmul.f32 1.442695, %v1951_v62  ;;  %4425 = vmatpush3.bf16.xpose.msra.mxu0 %v4422_v59 }
 0x3aa   : > { %v1863_v48 = vpop.xlane.xlu1 %1862  ;;  %v4454_v0 = vpack.c.bf16 %v5689_v63, %v5687_v39  ;;  %v5695_v40 = vpop.eup %4603  ;;  %v2024_v15 = vmul.f32 1.442695, %v1952_v24 }
 0x3ab   : > { %4613 = vpow2.f32 %v2022_v46  ;;  %v1967_v5 = vsub.f32 %v5358_v11, %v1863_v48  ;;  %v1865_v8 = vpop.xlane.xlu0 %1864 }
 0x3ac   : > { %4455 = vmatprep.subr.bf16.mxu1 %v4454_v0  ;;  %4615 = vpow2.f32 %v2052_v21  ;;  %v1968_v53 = vsub.f32 %v5362_v12, %v1865_v8 }
 0x3ad   : > { %v5697_v50 = vpop.eup %4605  ;;  %v2054_v52 = vmul.f32 1.442695, %v1967_v5  ;;  %4457 = vmatpush3.bf16.xpose.msra.mxu1 %v4454_v0 }
 0x3ae   : > { %v1835_v10 = vpop.xlane.xlu1 %1834  ;;  %v4426_v23 = vpack.c.bf16 %v5697_v50, %v5695_v40  ;;  %v5703_v54 = vpop.eup %4607  ;;  %v2056_v57 = vmul.f32 1.442695, %v1968_v53 }
 0x3af   : > { %4617 = vpow2.f32 %v2054_v52  ;;  %v1953_v20 = vsub.f32 %v5373_v25, %v1835_v10  ;;  %v1837_v11 = vpop.xlane.xlu0 %1836 }
 0x3b0   : > { %4427 = vmatprep.subr.bf16.mxu0 %v4426_v23  ;;  %4619 = vpow2.f32 %v2024_v15  ;;  %v1954_v36 = vsub.f32 %v5379_v29, %v1837_v11 }
 0x3b1   : > { %v5705_v26 = vpop.eup %4609  ;;  %v2026_v60 = vmul.f32 1.442695, %v1953_v20  ;;  %4429 = vmatpush3.bf16.xpose.msra.mxu0 %v4426_v23 }
 0x3b2   : > { %v1867_v12 = vpop.xlane.xlu1 %1866  ;;  %v4458_v28 = vpack.c.bf16 %v5705_v26, %v5703_v54  ;;  %v5711_v59 = vpop.eup %4611  ;;  %v2028_v46 = vmul.f32 1.442695, %v1954_v36 }
 0x3b3   : > { %4621 = vpow2.f32 %v2026_v60  ;;  %v1969_v17 = vsub.f32 %v5384_v30, %v1867_v12  ;;  %v1869_v25 = vpop.xlane.xlu0 %1868 }
 0x3b4   : > { %4459 = vmatprep.subr.bf16.mxu1 %v4458_v28  ;;  %4623 = vpow2.f32 %v2056_v57  ;;  %v1970_v21 = vsub.f32 %v5388_v31, %v1869_v25 }
 0x3b5   : > { %v5713_v62 = vpop.eup %4613  ;;  %v2058_v42 = vmul.f32 1.442695, %v1969_v17  ;;  %4461 = vmatpush3.bf16.xpose.msra.mxu1 %v4458_v28 }
 0x3b6   : > { %v1839_v29 = vpop.xlane.xlu1 %1838  ;;  %v4430_v24 = vpack.c.bf16 %v5713_v62, %v5711_v59  ;;  %v5719_v0 = vpop.eup %4615  ;;  %v2060_v52 = vmul.f32 1.442695, %v1970_v21 }
 0x3b7   : > { %4625 = vpow2.f32 %v2058_v42  ;;  %v1955_v48 = vsub.f32 %v5399_v43, %v1839_v29  ;;  %v1841_v30 = vpop.xlane.xlu0 %1840  ;;  %v6306_v29 = vld [vmem:[#allocation11_spill] sm:$0xff] }
 0x3b8   : > { %4431 = vmatprep.subr.bf16.mxu0 %v4430_v24  ;;  %4627 = vpow2.f32 %v2028_v46  ;;  %v1956_v15 = vsub.f32 %v5405_v49, %v1841_v30 }
 0x3b9   : > { %v5721_v5 = vpop.eup %4617  ;;  %v2030_v8 = vmul.f32 1.442695, %v1955_v48  ;;  %4433 = vmatpush3.bf16.xpose.msra.mxu0 %v4430_v24 }
 0x3ba   : > { %v1871_v31 = vpop.xlane.xlu1 %1870  ;;  %v4462_v53 = vpack.c.bf16 %v5721_v5, %v5719_v0  ;;  %v5727_v23 = vpop.eup %4619  ;;  %v2032_v60 = vmul.f32 1.442695, %v1956_v15  ;;  %v6307_v15 = vld [vmem:[#allocation12_spill] sm:$0xff] }
 0x3bb   : > { %4629 = vpow2.f32 %v2030_v8  ;;  %v1971_v10 = vsub.f32 %v5410_v51, %v1871_v31  ;;  %v1873_v43 = vpop.xlane.xlu0 %1872 }
 0x3bc   : > { %4463 = vmatprep.subr.bf16.mxu1 %v4462_v53  ;;  %4631 = vpow2.f32 %v2060_v52  ;;  %v1972_v57 = vsub.f32 %v5414_v55, %v1873_v43 }
 0x3bd   : > { %v5729_v20 = vpop.eup %4621  ;;  %v2062_v11 = vmul.f32 1.442695, %v1971_v10  ;;  %4465 = vmatpush3.bf16.xpose.msra.mxu1 %v4462_v53 }
 0x3be   : > { %v1843_v49 = vpop.xlane.xlu1 %1842  ;;  %v4434_v36 = vpack.c.bf16 %v5729_v20, %v5727_v23  ;;  %v5735_v28 = vpop.eup %4623  ;;  %v2064_v42 = vmul.f32 1.442695, %v1972_v57 }
 0x3bf   : > { %4633 = vpow2.f32 %v2062_v11  ;;  %v1957_v12 = vsub.f32 %v5429_v1, %v1843_v49  ;;  %v1845_v51 = vpop.xlane.xlu0 %1844 }
 0x3c0   : > { %4435 = vmatprep.subr.bf16.mxu0 %v4434_v36  ;;  %4635 = vpow2.f32 %v2032_v60  ;;  %v1958_v46 = vsub.f32 %v5437_v9, %v1845_v51  ;;  %v6308_v60 = vld [vmem:[#allocation13_spill] sm:$0xff] }
 0x3c1   : > { %v5737_v17 = vpop.eup %4625  ;;  %v2034_v25 = vmul.f32 1.442695, %v1957_v12  ;;  %4437 = vmatpush3.bf16.xpose.msra.mxu0 %v4434_v36 }
 0x3c2   : > { %v1875_v55 = vpop.xlane.xlu1 %1874  ;;  %v4466_v21 = vpack.c.bf16 %v5737_v17, %v5735_v28  ;;  %v5743_v48 = vpop.eup %4627  ;;  %v2036_v52 = vmul.f32 1.442695, %v1958_v46  ;;  %v6309_v46 = vld [vmem:[#allocation14_spill] sm:$0xff] }
 0x3c3   : > { %4637 = vpow2.f32 %v2034_v25  ;;  %v1973_v24 = vsub.f32 %v6306_v29, %v1875_v55  ;;  %v1877_v1 = vpop.xlane.xlu0 %1876 }
 0x3c4   : > { %4467 = vmatprep.subr.bf16.mxu1 %v4466_v21  ;;  %4639 = vpow2.f32 %v2064_v42  ;;  %v1974_v31 = vsub.f32 %v6307_v15, %v1877_v1 }
 0x3c5   : > { %v5745_v30 = vpop.eup %4629  ;;  %v2066_v8 = vmul.f32 1.442695, %v1973_v24  ;;  %4469 = vmatpush3.bf16.xpose.msra.mxu1 %v4466_v21 }
 0x3c6   : > { %v1847_v9 = vpop.xlane.xlu1 %1846  ;;  %v4438_v53 = vpack.c.bf16 %v5745_v30, %v5743_v48  ;;  %v5751_v11 = vpop.eup %4631  ;;  %v2068_v12 = vmul.f32 1.442695, %v1974_v31 }
 0x3c7   : > { %4641 = vpow2.f32 %v2066_v8  ;;  %v1959_v10 = vsub.f32 %v5468_v19, %v1847_v9  ;;  %v1881_v43 = vpop.xlane.xlu0 %1880 }
 0x3c8   : > { %v1976_v57 = vsub.f32 %v6308_v60, %v1881_v43  ;;  %4439 = vmatprep.subr.bf16.mxu0 %v4438_v53  ;;  %4643 = vpow2.f32 %v2036_v52 }
 0x3c9   : > { %v5754_v49 = vpop.eup %4633  ;;  %v2038_v36 = vmul.f32 1.442695, %v1959_v10  ;;  %4441 = vmatpush3.bf16.xpose.msra.mxu0 %v4438_v53 }
 0x3ca   : > { %v2072_v51 = vmul.f32 1.442695, %v1976_v57  ;;  %v1879_v25 = vpop.xlane.xlu1 %1878  ;;  %v4470_v42 = vpack.c.bf16 %v5754_v49, %v5751_v11  ;;  %v5759_v21 = vpop.eup %4635 }
 0x3cb   : > { %4645 = vpow2.f32 %v2038_v36  ;;  %v1975_v19 = vsub.f32 %v6309_v46, %v1879_v25  ;;  %v1913_v55 = vpop.xlane.xlu0 %1912 }
 0x3cc   : > { %4647 = vpow2.f32 %v2072_v51  ;;  %4471 = vmatprep.subr.bf16.mxu1 %v4470_v42  ;;  %v1992_v1 = vsub.f32 %v5480_v47, %v1913_v55 }
 0x3cd   : > { %v5761_v29 = vpop.eup %4637  ;;  %v2070_v24 = vmul.f32 1.442695, %v1975_v19  ;;  %4473 = vmatpush3.bf16.xpose.msra.mxu1 %v4470_v42  ;;  %4649 = vpow2.f32 %v2068_v12  ;;  %v6310_v12 = vld [vmem:[#allocation15_spill] sm:$0xff] }
 0x3ce   : > { %v1883_v8 = vpop.xlane.xlu1 %1882  ;;  %v4442_v52 = vpack.c.bf16 %v5761_v29, %v5759_v21  ;;  %v5767_v9 = vpop.eup %4639  ;;  %v2104_v60 = vmul.f32 1.442695, %v1992_v1 }
 0x3cf   : > { %4651 = vpow2.f32 %v2070_v24  ;;  %v1977_v15 = vsub.f32 %v5490_v38, %v1883_v8  ;;  %v1885_v31 = vpop.xlane.xlu0 %1884 }
 0x3d0   : > { %v1978_v53 = vsub.f32 %v5496_v13, %v1885_v31  ;;  %4443 = vmatprep.subr.bf16.mxu0 %v4442_v52 }
 0x3d1   : > { %v5770_v10 = vpop.eup %4641  ;;  %v2074_v43 = vmul.f32 1.442695, %v1977_v15  ;;  %4445 = vmatpush3.bf16.xpose.msra.mxu0 %v4442_v52  ;;  %v6311_v15 = vld [vmem:[#allocation16_spill] sm:$0xff] }
 0x3d2   : > { %v2076_v57 = vmul.f32 1.442695, %v1978_v53  ;;  %v1915_v47 = vpop.xlane.xlu1 %1914  ;;  %v4474_v36 = vpack.c.bf16 %v5770_v10, %v5767_v9  ;;  %v5775_v25 = vpop.eup %4643 }
 0x3d3   : > { %4653 = vpow2.f32 %v2074_v43  ;;  %v1993_v51 = vsub.f32 %v6310_v12, %v1915_v47  ;;  %v1917_v38 = vpop.xlane.xlu0 %1916  ;;  %v6312_v47 = vld [vmem:[#allocation17_spill] sm:$0xff] }
 0x3d4   : > { %4655 = vpow2.f32 %v2076_v57  ;;  %4475 = vmatprep.subr.bf16.mxu1 %v4474_v36  ;;  %v1994_v19 = vsub.f32 %v5510_v44, %v1917_v38 }
 0x3d5   : > { %v5777_v13 = vpop.eup %4645  ;;  %v2106_v42 = vmul.f32 1.442695, %v1993_v51  ;;  %4477 = vmatpush3.bf16.xpose.msra.mxu1 %v4474_v36  ;;  %4657 = vpow2.f32 %v2104_v60 }
 0x3d6   : > { %v4648_v46 = vpop.eup %4647  ;;  %v1887_v55 = vpop.xlane.xlu1 %1886  ;;  %v4446_v24 = vpack.c.bf16 %v5777_v13, %v5775_v25  ;;  %v2108_v60 = vmul.f32 1.442695, %v1994_v19 }
 0x3d7   : > { %4659 = vpow2.f32 %v2106_v42  ;;  %v1979_v1 = vsub.f32 %v5516_v58, %v1887_v55  ;;  %v1889_v8 = vpop.xlane.xlu0 %1888  ;;  %2200 = vadd.xlane.f32.xlu0 %v4648_v46  ;;  %v5783_v52 = vpop.eup %4649  ;;  %v6313_v55 = vld [vmem:[#allocation18_spill] sm:$0xff] }
 0x3d8   : > { %v1980_v31 = vsub.f32 %v6311_v15, %v1889_v8  ;;  %4447 = vmatprep.subr.bf16.mxu0 %v4446_v24  ;;  %v6314_v8 = vld [vmem:[#allocation19_spill] sm:$0xff] }
 0x3d9   : > { %v5786_v53 = vpop.eup %4651  ;;  %v2078_v43 = vmul.f32 1.442695, %v1979_v1  ;;  %4449 = vmatpush3.bf16.xpose.msra.mxu0 %v4446_v24 }
 0x3da   : > { %v1919_v44 = vpop.xlane.xlu1 %1918  ;;  %v4478_v57 = vpack.c.bf16 %v5786_v53, %v5783_v52  ;;  %v2080_v12 = vmul.f32 1.442695, %v1980_v31 }
 0x3db   : > { %4661 = vpow2.f32 %v2078_v43  ;;  %v1995_v36 = vsub.f32 %v6312_v47, %v1919_v44  ;;  %v1921_v58 = vpop.xlane.xlu0 %1920  ;;  %2144 = vadd.xlane.f32.xlu0 %v5695_v40  ;;  %v6315_v40 = vld [vmem:[#allocation4_spill] sm:$0xff] }
 0x3dc   : > { %4479 = vmatprep.subr.bf16.mxu1 %v4478_v57  ;;  %4663 = vpow2.f32 %v2108_v60  ;;  %v1996_v24 = vsub.f32 %v6313_v55, %v1921_v58  ;;  %v6316_v60 = vld [vmem:[#allocation7_spill] sm:$0xff] }
 0x3dd   : > { %v4654_v51 = vpop.eup %4653  ;;  %v2110_v38 = vmul.f32 1.442695, %v1995_v36  ;;  %4481 = vmatpush3.bf16.xpose.msra.mxu1 %v4478_v57 }
 0x3de   : > { %v4656_v42 = vpop.eup %4655  ;;  %v1891_v19 = vpop.xlane.xlu1 %1890  ;;  %2202 = vadd.xlane.f32.xlu1 %v4654_v51  ;;  %v4482_v1 = vpack.c.bf16 %v4654_v51, %v4648_v46  ;;  %v2112_v47 = vmul.f32 1.442695, %v1996_v24  ;;  %v6318_v24 = vld [vmem:[#allocation9_spill] sm:$0xff] }
 0x3df   : > { %4665 = vpow2.f32 %v2110_v38  ;;  %v1981_v15 = vsub.f32 %v6314_v8, %v1891_v19  ;;  %v1893_v43 = vpop.xlane.xlu0 %1892  ;;  %2204 = vadd.xlane.f32.xlu0 %v4656_v42  ;;  %v5794_v44 = vpop.eup %4657  ;;  %v6317_v38 = vld [vmem:[#allocation5_spill] sm:$0xff] }
 0x3e0   : > { %4667 = vpow2.f32 %v2080_v12  ;;  %4119 = vmatmul.mubr.f32.vlgmr.msra.gmra.mrb[32].mxu0 %v6315_v40  ;;  %4483 = vmatprep.subr.bf16.mxu0 %v4482_v1  ;;  %v1982_v46 = vsub.f32 %v5544_v4, %v1893_v43 }
 0x3e1   : > { %v5797_v31 = vpop.eup %4659  ;;  %v2082_v57 = vmul.f32 1.442695, %v1981_v15  ;;  %4485 = vmatpush3.bf16.xpose.msra.mxu0 %v4482_v1  ;;  %4188 = vmatprep.mubr.f32.mxu0 %v6316_v60 }
 0x3e2   : > { %v1923_v36 = vpop.xlane.xlu1 %1922  ;;  %2146 = vadd.xlane.f32.xlu1 %v5697_v50  ;;  %v4514_v58 = vpack.c.bf16 %v5797_v31, %v5794_v44  ;;  %v2084_v4 = vmul.f32 1.442695, %v1982_v46 }
 0x3e3   : > { %4669 = vpow2.f32 %v2082_v57  ;;  %v1997_v12 = vsub.f32 %v5549_v32, %v1923_v36  ;;  %v1925_v51 = vpop.xlane.xlu0 %1924  ;;  %2150 = vadd.xlane.f32.xlu0 %v5713_v62 }
 0x3e4   : > { %4154 = vmatmul.mubr.f32.vlgmr.msra.gmra.mrb[56].mxu1 %v6317_v38  ;;  %4515 = vmatprep.subr.bf16.mxu1 %v4514_v58  ;;  %4671 = vpow2.f32 %v2112_v47  ;;  %v1998_v50 = vsub.f32 %v5555_v6, %v1925_v51 }
 0x3e5   : > { %v4662_v55 = vpop.eup %4661  ;;  %v2114_v19 = vmul.f32 1.442695, %v1997_v12  ;;  %4517 = vmatpush3.bf16.xpose.msra.mxu1 %v4514_v58  ;;  %4223 = vmatprep.mubr.f32.mxu1 %v6318_v24 }
 0x3e6   : > { %v1895_v1 = vpop.xlane.xlu1 %1894  ;;  %2206 = vadd.xlane.f32.xlu1 %v4662_v55  ;;  %v4486_v8 = vpack.c.bf16 %v4662_v55, %v4656_v42  ;;  %v5811_v62 = vpop.eup %4663  ;;  %v2116_v6 = vmul.f32 1.442695, %v1998_v50 }
 0x3e7   : > { %4673 = vpow2.f32 %v2114_v19  ;;  %v1983_v32 = vsub.f32 %v5562_v35, %v1895_v1  ;;  %v1897_v15 = vpop.xlane.xlu0 %1896  ;;  %2148 = vadd.xlane.f32.xlu0 %v5711_v59 }
 0x3e8   : > { %v1984_v43 = vsub.f32 %v5568_v22, %v1897_v15  ;;  %4487 = vmatprep.subr.bf16.mxu0 %v4486_v8  ;;  %4675 = vpow2.f32 %v2084_v4 }
 0x3e9   : > { %v5814_v40 = vpop.eup %4665  ;;  %v2086_v57 = vmul.f32 1.442695, %v1983_v32  ;;  %4489 = vmatpush3.bf16.xpose.msra.mxu0 %v4486_v8 }
 0x3ea   : > { %v4668_v60 = vpop.eup %4667  ;;  %v2088_v47 = vmul.f32 1.442695, %v1984_v43  ;;  %v1927_v42 = vpop.xlane.xlu1 %1926  ;;  %v4518_v35 = vpack.c.bf16 %v5814_v40, %v5811_v62 }
 0x3eb   : > { %4677 = vpow2.f32 %v2086_v57  ;;  %v1999_v59 = vsub.f32 %v5574_v7, %v1927_v42  ;;  %v1929_v46 = vpop.xlane.xlu0 %1928  ;;  %2208 = vadd.xlane.f32.xlu0 %v4668_v60 }
 0x3ec   : > { %4679 = vpow2.f32 %v2088_v47  ;;  %4519 = vmatprep.subr.bf16.mxu1 %v4518_v35  ;;  %v2000_v58 = vsub.f32 %v5580_v14, %v1929_v46 }
 0x3ed   : > { %v4670_v22 = vpop.eup %4669  ;;  %v2118_v36 = vmul.f32 1.442695, %v1999_v59  ;;  %4521 = vmatpush3.bf16.xpose.msra.mxu1 %v4518_v35  ;;  %4681 = vpow2.f32 %v2116_v6 }
 0x3ee   : > { %v1899_v12 = vpop.xlane.xlu1 %1898  ;;  %2210 = vadd.xlane.f32.xlu1 %v4670_v22  ;;  %v4490_v51 = vpack.c.bf16 %v4670_v22, %v4668_v60  ;;  %v5822_v7 = vpop.eup %4671  ;;  %v2120_v50 = vmul.f32 1.442695, %v2000_v58 }
 0x3ef   : > { %4683 = vpow2.f32 %v2118_v36  ;;  %v1985_v38 = vsub.f32 %v5586_v41, %v1899_v12  ;;  %v1901_v55 = vpop.xlane.xlu0 %1900  ;;  %2154 = vadd.xlane.f32.xlu0 %v5729_v20 }
 0x3f0   : > { %v1986_v19 = vsub.f32 %v5592_v34, %v1901_v55  ;;  %4491 = vmatprep.subr.bf16.mxu0 %v4490_v51 }
 0x3f1   : > { %v5825_v24 = vpop.eup %4673  ;;  %v2090_v4 = vmul.f32 1.442695, %v1985_v38  ;;  %4493 = vmatpush3.bf16.xpose.msra.mxu0 %v4490_v51 }
 0x3f2   : > { %v2092_v14 = vmul.f32 1.442695, %v1986_v19  ;;  %v1931_v1 = vpop.xlane.xlu1 %1930  ;;  %2158 = vadd.xlane.f32.xlu1 %v5745_v30  ;;  %v4522_v41 = vpack.c.bf16 %v5825_v24, %v5822_v7  ;;  %v4676_v32 = vpop.eup %4675 }
 0x3f3   : > { %4685 = vpow2.f32 %v2090_v4  ;;  %v2001_v20 = vsub.f32 %v5598_v3, %v1931_v1  ;;  %v1933_v8 = vpop.xlane.xlu0 %1932 }
 0x3f4   : > { %4687 = vpow2.f32 %v2092_v14  ;;  %4523 = vmatprep.subr.bf16.mxu1 %v4522_v41  ;;  %v2002_v57 = vsub.f32 %v5604_v33, %v1933_v8 }
 0x3f5   : > { %v4678_v34 = vpop.eup %4677  ;;  %v2122_v15 = vmul.f32 1.442695, %v2001_v20  ;;  %4525 = vmatpush3.bf16.xpose.msra.mxu1 %v4522_v41  ;;  %4689 = vpow2.f32 %v2120_v50 }
 0x3f6   : > { %v4680_v43 = vpop.eup %4679  ;;  %v1903_v60 = vpop.xlane.xlu1 %1902  ;;  %2214 = vadd.xlane.f32.xlu0 %v4678_v34  ;;  %v4494_v30 = vpack.c.bf16 %v4678_v34, %v4676_v32  ;;  %v2124_v59 = vmul.f32 1.442695, %v2002_v57 }
 0x3f7   : > { %4691 = vpow2.f32 %v2122_v15  ;;  %v1987_v6 = vsub.f32 %v5610_v61, %v1903_v60  ;;  %v1905_v47 = vpop.xlane.xlu0 %1904  ;;  %2216 = vadd.xlane.f32.xlu1 %v4680_v43  ;;  %v5833_v3 = vpop.eup %4681 }
 0x3f8   : > { %4495 = vmatprep.subr.bf16.mxu0 %v4494_v30  ;;  %v1988_v46 = vsub.f32 %v5616_v37, %v1905_v47 }
 0x3f9   : > { %v5835_v42 = vpop.eup %4683  ;;  %v2094_v35 = vmul.f32 1.442695, %v1987_v6  ;;  %4497 = vmatpush3.bf16.xpose.msra.mxu0 %v4494_v30  ;;  %v6321_v30 = vld [vmem:[#allocation22_spill] sm:$0xff] }
 0x3fa   : > { %v1935_v22 = vpop.xlane.xlu1 %1934  ;;  %2152 = vadd.xlane.f32.xlu0 %v5727_v23  ;;  %v4526_v33 = vpack.c.bf16 %v5835_v42, %v5833_v3  ;;  %v2096_v38 = vmul.f32 1.442695, %v1988_v46 }
 0x3fb   : > { %4693 = vpow2.f32 %v2094_v35  ;;  %v2003_v61 = vsub.f32 %v5622_v27, %v1935_v22  ;;  %v1937_v36 = vpop.xlane.xlu0 %1936  ;;  %2162 = vadd.xlane.f32.xlu1 %v5761_v29  ;;  %v6322_v22 = vld [vmem:[#allocation23_spill] sm:$0xff] }
 0x3fc   : > { %4527 = vmatprep.subr.bf16.mxu1 %v4526_v33  ;;  %4695 = vpow2.f32 %v2124_v59  ;;  %v2004_v37 = vsub.f32 %v5629_v45, %v1937_v36 }
 0x3fd   : > { %v4686_v58 = vpop.eup %4685  ;;  %v2126_v12 = vmul.f32 1.442695, %v2003_v61  ;;  %4529 = vmatpush3.bf16.xpose.msra.mxu1 %v4526_v33 }
 0x3fe   : > { %v4688_v51 = vpop.eup %4687  ;;  %v1907_v55 = vpop.xlane.xlu1 %1906  ;;  %2212 = vadd.xlane.f32.xlu0 %v4676_v32  ;;  %v4498_v23 = vpack.c.bf16 %v4686_v58, %v4680_v43  ;;  %v2128_v14 = vmul.f32 1.442695, %v2004_v37  ;;  %v6320_v43 = vld [vmem:[#allocation21_spill] sm:$0xff] }
 0x3ff   : > { %4697 = vpow2.f32 %v2126_v12  ;;  %v1989_v19 = vsub.f32 %v5635_v16, %v1907_v55  ;;  %2220 = vadd.xlane.f32.xlu1 %v4688_v51  ;;  %v1909_v27 = vpop.xlane.xlu0 %1908  ;;  %v5845_v4 = vpop.eup %4689  ;;  %v6319_v16 = vld [vmem:[#allocation20_spill] sm:$0xff] }
 0x400   : > { %4499 = vmatprep.subr.bf16.mxu0 %v4498_v23  ;;  %4699 = vpow2.f32 %v2096_v38  ;;  %v1990_v1 = vsub.f32 %v5641_v2, %v1909_v27 }
 0x401   : > { %v5847_v29 = vpop.eup %4691  ;;  %v2098_v50 = vmul.f32 1.442695, %v1989_v19  ;;  %4501 = vmatpush3.bf16.xpose.msra.mxu0 %v4498_v23 }
 0x402   : > { %v1939_v45 = vpop.xlane.xlu1 %1938  ;;  %2218 = vadd.xlane.f32.xlu0 %v4686_v58  ;;  %v4530_v41 = vpack.c.bf16 %v5847_v29, %v5845_v4  ;;  %v2100_v15 = vmul.f32 1.442695, %v1990_v1 }
 0x403   : > { %4701 = vpow2.f32 %v2098_v50  ;;  %v2005_v20 = vsub.f32 %v6319_v16, %v1939_v45  ;;  %2170 = vadd.xlane.f32.xlu1 %v5677_v56  ;;  %v1941_v8 = vpop.xlane.xlu0 %1940 }
 0x404   : > { %4531 = vmatprep.subr.bf16.mxu1 %v4530_v41  ;;  %4703 = vpow2.f32 %v2128_v14  ;;  %v2006_v57 = vsub.f32 %v6320_v43, %v1941_v8 }
 0x405   : > { %v4694_v32 = vpop.eup %4693  ;;  %v2130_v34 = vmul.f32 1.442695, %v2005_v20  ;;  %4533 = vmatpush3.bf16.xpose.msra.mxu1 %v4530_v41 }
 0x406   : > { %v1911_v2 = vpop.xlane.xlu1 %1910  ;;  %2156 = vadd.xlane.f32.xlu0 %v5743_v48  ;;  %v4502_v60 = vpack.c.bf16 %v4694_v32, %v4688_v51  ;;  %v5858_v47 = vpop.eup %4695  ;;  %v2132_v59 = vmul.f32 1.442695, %v2006_v57 }
 0x407   : > { %4705 = vpow2.f32 %v2130_v34  ;;  %v1991_v6 = vsub.f32 %v6321_v30, %v1911_v2  ;;  %2174 = vadd.xlane.f32.xlu1 %v5689_v63 }
 0x408   : > { %4503 = vmatprep.subr.bf16.mxu0 %v4502_v60  ;;  %4707 = vpow2.f32 %v2100_v15 }
 0x409   : > { %v5860_v56 = vpop.eup %4697  ;;  %v2102_v35 = vmul.f32 1.442695, %v1991_v6  ;;  %4505 = vmatpush3.bf16.xpose.msra.mxu0 %v4502_v60 }
 0x40a   : > { %v1943_v46 = vpop.xlane.xlu1 %1942  ;;  %2222 = vadd.xlane.f32.xlu0 %v4694_v32  ;;  %v4534_v48 = vpack.c.bf16 %v5860_v56, %v5858_v47  ;;  %v4700_v63 = vpop.eup %4699 }
 0x40b   : > { %4709 = vpow2.f32 %v2102_v35  ;;  %v2007_v33 = vsub.f32 %v6322_v22, %v1943_v46  ;;  %2172 = vadd.xlane.f32.xlu1 %v5687_v39  ;;  %v3089_v35 = vld [vmem:[%s6264_s4 + $0x8] sm:$0xff] }
 0x40c   : > { %4535 = vmatprep.subr.bf16.mxu1 %v4534_v48  ;;  %4711 = vpow2.f32 %v2132_v59  ;;  %v3090_v59 = vld [vmem:[%s6264_s4 + $0x10] sm:$0xff] }
 0x40d   : > { %v4702_v61 = vpop.eup %4701  ;;  %v2134_v36 = vmul.f32 1.442695, %v2007_v33  ;;  %4537 = vmatpush3.bf16.xpose.msra.mxu1 %v4534_v48 }
 0x40e   : > { %2160 = vadd.xlane.f32.xlu0 %v5759_v21  ;;  %v4506_v58 = vpack.c.bf16 %v4702_v61, %v4700_v63  ;;  %v4704_v12 = vpop.eup %4703 }
 0x40f   : > { %4713 = vpow2.f32 %v2134_v36  ;;  %2178 = vadd.xlane.f32.xlu1 %v5705_v26 }
 0x410   : > { %4507 = vmatprep.subr.bf16.mxu0 %v4506_v58 }
 0x411   : > { %v4706_v51 = vpop.eup %4705  ;;  %4509 = vmatpush3.bf16.xpose.msra.mxu0 %v4506_v58 }
 0x412   : > { %2166 = vadd.xlane.f32.xlu0 %v5777_v13  ;;  %v4538_v38 = vpack.c.bf16 %v4706_v51, %v4704_v12  ;;  %v4708_v39 = vpop.eup %4707 }
 0x413   : > { %2176 = vadd.xlane.f32.xlu1 %v5703_v54  ;;  %v6323_v54 = vld [vmem:[#allocation6_spill] sm:$0xff] }
 0x414   : > { %4539 = vmatprep.subr.bf16.mxu1 %v4538_v38 }
 0x415   : > { %v4710_v37 = vpop.eup %4709  ;;  %4541 = vmatpush3.bf16.xpose.msra.mxu1 %v4538_v38 }
 0x416   : > { %2226 = vadd.xlane.f32.xlu0 %v4702_v61  ;;  %v4510_v55 = vpack.c.bf16 %v4710_v37, %v4708_v39  ;;  %v4712_v21 = vpop.eup %4711 }
 0x417   : > { %2180 = vadd.xlane.f32.xlu1 %v5719_v0  ;;  %v6324_v0 = vld [vmem:[#allocation8_spill] sm:$0xff] }
 0x418   : > { %4511 = vmatprep.subr.bf16.mxu0 %v4510_v55 }
 0x419   : > { %v4714_v26 = vpop.eup %4713  ;;  %4513 = vmatpush3.bf16.xpose.msra.mxu0 %v4510_v55 }
 0x41a   : > { %2164 = vadd.xlane.f32.xlu0 %v5775_v25  ;;  %v4542_v23 = vpack.c.bf16 %v4714_v26, %v4712_v21 }
 0x41b   : > { %2184 = vadd.xlane.f32.xlu1 %v5735_v28  ;;  %v5900_v28 = vpop.xlane.xlu1 %2138 }
 0x41c   : > { %4543 = vmatprep.subr.bf16.mxu1 %v4542_v23 }
 0x41d   : > { %4545 = vmatpush3.bf16.xpose.msra.mxu1 %v4542_v23 }
 0x41e   : > { %2224 = vadd.xlane.f32.xlu0 %v4700_v63  ;;  %v3091_v63 = vld [vmem:[%s6264_s4 + $0x18] sm:$0xff] }
 0x41f   : > { %2190 = vadd.xlane.f32.xlu1 %v5754_v49  ;;  %v4552_v36 = vpack.c.bf16 %v3091_v63, %v3090_v59 }
 0x420   : > { %4189 = vmatmul.mubr.f32.vlgmr.msra.gmra.mrb[34].mxu0 %v6323_v54 }
 0x422   : > { %2168 = vadd.xlane.f32.xlu0 %v5679_v18  ;;  %v5896_v18 = vpop.xlane.xlu0 %2136 }
 0x423   : > { %2188 = vadd.xlane.f32.xlu1 %v5751_v11 }
 0x424   : > { %4224 = vmatmul.mubr.f32.vlgmr.msra.gmra.mrb[58].mxu1 %v6324_v0 }
 0x426   : > { %2230 = vadd.xlane.f32.xlu0 %v4710_v37 }
 0x427   : > { %2194 = vadd.xlane.f32.xlu1 %v5770_v10 }
 0x42a   : > { %2228 = vadd.xlane.f32.xlu0 %v4708_v39 }
 0x42b   : > { %2198 = vadd.xlane.f32.xlu1 %v5786_v53 }
 0x42e   : > { %2182 = vadd.xlane.f32.xlu0 %v5721_v5  ;;  %v5898_v5 = vpop.xlane.xlu0 %2140 }
 0x42f   : > { %2234 = vadd.xlane.f32.xlu1 %v5797_v31 }
 0x432   : > { %2186 = vadd.xlane.f32.xlu0 %v5737_v17 }
 0x433   : > { %2238 = vadd.xlane.f32.xlu1 %v5814_v40  ;;  %v5902_v11 = vpop.xlane.xlu1 %2142 }
 0x436   : > { %2192 = vadd.xlane.f32.xlu0 %v5767_v9 }
 0x437   : > { %2236 = vadd.xlane.f32.xlu1 %v5811_v62 }
 0x43a   : > { %2196 = vadd.xlane.f32.xlu0 %v5783_v52  ;;  %v6325_v52 = vlaneseq }
 0x43b   : > { %2242 = vadd.xlane.f32.xlu1 %v5825_v24 }
 0x43c   : > { %v5911_v53 = vshrl.u32 %v6325_v52, 7 }
 0x43e   : > { %2232 = vadd.xlane.f32.xlu0 %v5794_v44  ;;  %v6326_v44 = vld [vmem:[#allocation10_spill] sm:$0xff] }
 0x43f   : > { %2246 = vadd.xlane.f32.xlu1 %v5835_v42  ;;  %v2704_v31 = vadd.s32 4294967288, %v6326_v44  ;;  %v2711_v62 = vadd.s32 4294967280, %v6326_v44  ;;  %v2718_v45 = vadd.s32 4294967272, %v6326_v44  ;;  %v2725_v34 = vadd.s32 4294967264, %v6326_v44 }
 0x440   : > { %v2732_v2 = vadd.s32 4294967256, %v6326_v44  ;;  %v2739_v54 = vadd.s32 4294967248, %v6326_v44  ;;  %v2753_v0 = vadd.s32 4294967232, %v6326_v44  ;;  %v2774_v59 = vadd.s32 4294967208, %v6326_v44 }
 0x441   : > { %v5922_v42 = vsub.s32 %v2704_v31, %v5911_v53  ;;  %v5925_v27 = vsub.s32 %v2711_v62, %v5911_v53  ;;  %v5934_v8 = vsub.s32 %v2718_v45, %v5911_v53  ;;  %v5945_v30 = vsub.s32 %v2725_v34, %v5911_v53 }
 0x442   : > { %2240 = vadd.xlane.f32.xlu0 %v5822_v7  ;;  %v5967_v61 = vsub.s32 %v2732_v2, %v5911_v53  ;;  %v6006_v52 = vsub.s32 %v2739_v54, %v5911_v53  ;;  %v2760_v31 = vadd.s32 4294967224, %v6326_v44 }
 0x443   : > { %2250 = vadd.xlane.f32.xlu1 %v5847_v29 }
 0x446   : > { %2244 = vadd.xlane.f32.xlu0 %v5833_v3  ;;  %v5919_v3 = vsub.s32 %v6326_v44, %v5911_v53 }
 0x447   : > { %2248 = vadd.xlane.f32.xlu1 %v5845_v4 }
 0x44a   : > { %2256 = vadd.xlane.f32.xlu0 %v4704_v12 }
 0x44b   : > { %2254 = vadd.xlane.f32.xlu1 %v5860_v56  ;;  %v3088_v56 = vld [vmem:[%s6264_s4] sm:$0xff] }
 0x44c   : > { %v4546_v22 = vpack.c.bf16 %v3089_v35, %v3088_v56 }
 0x44e   : > { %2260 = vadd.xlane.f32.xlu0 %v4712_v21  ;;  %4548 = vmatprep.subr.msk.bf16.mxu0 %vm5959_vm8, %v4546_v22 }
 0x44f   : > { %2252 = vadd.xlane.f32.xlu1 %v5858_v47  ;;  %4558 = vmatprep.subr.msk.bf16.mxu1 %vm5959_vm8, %v4546_v22 }
 0x450   : > { %4551 = vmatpush3.bf16.xpose.msk.msra.mxu0 %vm5959_vm8, %v4546_v22  ;;  %4560 = vmatpush3.bf16.xpose.msk.msra.mxu1 %vm5959_vm8, %v4546_v22 }
 0x451   : > { %4554 = vmatprep.subr.msk.bf16.mxu0 %vm5959_vm8, %v4552_v36  ;;  %4559 = vmatprep.subr.msk.bf16.mxu1 %vm5959_vm8, %v4552_v36 }
 0x453   : > { %2258 = vadd.xlane.f32.xlu1 %v4706_v51 }
 0x457   : > { %2262 = vadd.xlane.f32.xlu1 %v4714_v26 }
 0x458   : > { %4557 = vmatpush3.bf16.xpose.msk.msra.mxu0 %vm5959_vm8, %v4552_v36  ;;  %4561 = vmatpush3.bf16.xpose.msk.msra.mxu1 %vm5959_vm8, %v4552_v36  ;;  %vm2800_vm8 = vcmask 982912  }
 0x464   : > { %v2201_v17 = vpop.xlane.xlu0 %2200 }
 0x465   : > { %4715 = vrcp.f32 %v2201_v17 }
 0x468   : > { %v5904_v49 = vpop.xlane.xlu0 %2144 }
 0x46b   : > { %v2203_v9 = vpop.xlane.xlu1 %2202 }
 0x46c   : > { %4717 = vrcp.f32 %v2203_v9  ;;  %v2205_v10 = vpop.xlane.xlu0 %2204  ;;  %v2767_v9 = vadd.s32 4294967216, %v6326_v44 }
 0x46d   : > { %4719 = vrcp.f32 %v2205_v10 }
 0x46f   : > { %v5906_v25 = vpop.xlane.xlu1 %2146  ;;  %v4716_v7 = vpop.eup %4715 }
 0x470   : > { %v5908_v13 = vpop.xlane.xlu0 %2150  ;;  %v2891_v29 = vrot.slane %v4716_v7, %v5919_v3 }
 0x473   : > { %v2207_v40 = vpop.xlane.xlu1 %2206 }
 0x474   : > { %4721 = vrcp.f32 %v2207_v40  ;;  %v5915_v24 = vpop.xlane.xlu0 %2148 }
 0x476   : > { %v4718_v19 = vpop.eup %4717 }
 0x477   : > { %v4720_v4 = vpop.eup %4719  ;;  %v2895_v50 = vrot.slane %v4718_v19, %v5922_v42 }
 0x478   : > { %v2900_v14 = vrot.slane %v4720_v4, %v5925_v27  ;;  %v2209_v1 = vpop.xlane.xlu0 %2208 }
 0x479   : > { %v2896_v41 = vsel %vm2709_vm4, %v2895_v50, %v2891_v29  ;;  %4723 = vrcp.f32 %v2209_v1  ;;  %v6018_v29 = vsub.s32 %v2767_v9, %v5911_v53  ;;  %v6024_v1 = vsub.s32 %v2760_v31, %v5911_v53 }
 0x47a   : > { %v2901_v16 = vsel %vm2716_vm5, %v2900_v14, %v2896_v41  ;;  %v2781_v9 = vadd.s32 4294967200, %v6326_v44 }
 0x47b   : > { %v2211_v20 = vpop.xlane.xlu1 %2210 }
 0x47c   : > { %4725 = vrcp.f32 %v2211_v20  ;;  %v5938_v43 = vpop.xlane.xlu0 %2154 }
 0x47d   : > { %4727 = vrcp.f32 %v5896_v18  ;;  %v2746_v18 = vadd.s32 4294967240, %v6326_v44 }
 0x47e   : > { %v4722_v32 = vpop.eup %4721 }
 0x47f   : > { %v2905_v15 = vrot.slane %v4722_v32, %v5934_v8  ;;  %v5940_v57 = vpop.xlane.xlu1 %2158 }
 0x481   : > { %v2906_v60 = vsel %vm2723_vm6, %v2905_v15, %v2901_v16 }
 0x483   : > { %v4724_v6 = vpop.eup %4723  ;;  %v2215_v47 = vpop.xlane.xlu0 %2214 }
 0x484   : > { %v2910_v46 = vrot.slane %v4724_v6, %v5945_v30  ;;  %v2217_v48 = vpop.xlane.xlu1 %2216  ;;  %4729 = vrcp.f32 %v2215_v47 }
 0x485   : > { %4731 = vrcp.f32 %v2217_v48 }
 0x486   : > { %v4726_v58 = vpop.eup %4725  ;;  %v2911_v12 = vsel %vm2730_vm9, %v2910_v46, %v2906_v60 }
 0x487   : > { %v2915_v51 = vrot.slane %v4726_v58, %v5967_v61  ;;  %v2153_v38 = vpop.xlane.xlu0 %2152 }
 0x488   : > { %v5979_v39 = vpop.xlane.xlu1 %2162 }
 0x489   : > { %v2916_v37 = vsel %vm2737_vm10, %v2915_v51, %v2911_v12 }
 0x48b   : > { %v2213_v55 = vpop.xlane.xlu0 %2212 }
 0x48c   : > { %4733 = vrcp.f32 %v2213_v55  ;;  %v2221_v21 = vpop.xlane.xlu1 %2220 }
 0x48d   : > { %4735 = vrcp.f32 %v5900_v28 }
 0x48e   : > { %4737 = vrcp.f32 %v5898_v5  ;;  %v4728_v5 = vpop.eup %4727 }
 0x48f   : > { %4739 = vrcp.f32 %v2221_v21  ;;  %v2219_v26 = vpop.xlane.xlu0 %2218  ;;  %v4730_v17 = vpop.eup %4729  ;;  %v2703_v6 = vrot.slane %v4728_v5, %v5919_v3  ;;  %v6048_v21 = vsub.s32 %v2774_v59, %v5911_v53 }
 0x490   : > { %4741 = vrcp.f32 %v2219_v26  ;;  %v5993_v23 = vpop.xlane.xlu1 %2170 }
 0x491   : > { %4743 = vrcp.f32 %v5902_v11  ;;  %v4732_v11 = vpop.eup %4731 }
 0x492   : > { %4745 = vrcp.f32 %v5904_v49  ;;  %v6010_v49 = vsub.s32 %v2753_v0, %v5911_v53 }
 0x493   : > { %4747 = vrcp.f32 %v5906_v25  ;;  %v2157_v28 = vpop.xlane.xlu0 %2156  ;;  %v6013_v25 = vsub.s32 %v2746_v18, %v5911_v53 }
 0x494   : > { %4749 = vrcp.f32 %v5915_v24  ;;  %v6003_v10 = vpop.xlane.xlu1 %2174  ;;  %v2930_v45 = vrot.slane %v4732_v11, %v6010_v49 }
 0x495   : > { %4751 = vrcp.f32 %v2153_v38  ;;  %v2925_v4 = vrot.slane %v4730_v17, %v6013_v25 }
 0x496   : > { %v4734_v62 = vpop.eup %4733 }
 0x497   : > { %v4736_v40 = vpop.eup %4735  ;;  %v2920_v7 = vrot.slane %v4734_v62, %v6006_v52  ;;  %v2223_v24 = vpop.xlane.xlu0 %2222 }
 0x498   : > { %v4738_v19 = vpop.eup %4737  ;;  %4753 = vrcp.f32 %v2223_v24  ;;  %v6020_v50 = vpop.xlane.xlu1 %2172  ;;  %v2708_v20 = vrot.slane %v4736_v40, %v5922_v42 }
 0x499   : > { %v4740_v14 = vpop.eup %4739  ;;  %4755 = vrcp.f32 %v5908_v13  ;;  %v2921_v41 = vsel %vm2744_vm11, %v2920_v7, %v2916_v37  ;;  %v2715_v36 = vrot.slane %v4738_v19, %v5925_v27 }
 0x49a   : > { %v4742_v16 = vpop.eup %4741  ;;  %v2926_v32 = vsel %vm2751_vm12, %v2925_v4, %v2921_v41  ;;  %v2940_v47 = vrot.slane %v4740_v14, %v6018_v29  ;;  %4757 = vrcp.f32 %v2157_v28  ;;  %v2710_v22 = vsel %vm2709_vm4, %v2708_v20, %v2703_v6 }
 0x49b   : > { %v4744_v34 = vpop.eup %4743  ;;  %v2935_v15 = vrot.slane %v4742_v16, %v6024_v1  ;;  %v2161_v2 = vpop.xlane.xlu0 %2160  ;;  %v2931_v13 = vsel %vm2758_vm13, %v2930_v45, %v2926_v32  ;;  %4759 = vrcp.f32 %v5938_v43  ;;  %v2717_v37 = vsel %vm2716_vm5, %v2715_v36, %v2710_v22 }
 0x49c   : > { %v4746_v60 = vpop.eup %4745  ;;  %v6034_v56 = vpop.xlane.xlu1 %2178  ;;  %v2722_v33 = vrot.slane %v4744_v34, %v5934_v8  ;;  %4761 = vrcp.f32 %v2161_v2  ;;  %v2788_v32 = vadd.s32 4294967192, %v6326_v44  ;;  %v2795_v2 = vadd.s32 4294967184, %v6326_v44 }
 0x49d   : > { %v4748_v35 = vpop.eup %4747  ;;  %v2936_v46 = vsel %vm2765_vm15, %v2935_v15, %v2931_v13  ;;  %v2729_v58 = vrot.slane %v4746_v60, %v5945_v30  ;;  %4763 = vrcp.f32 %v5940_v57  ;;  %v2802_v6 = vadd.s32 4294967176, %v6326_v44 }
 0x49e   : > { %v4750_v48 = vpop.eup %4749  ;;  %v2941_v63 = vsel %vm2772_vm14, %v2940_v47, %v2936_v46  ;;  %v2736_v51 = vrot.slane %v4748_v35, %v5967_v61  ;;  %v2724_v54 = vsel %vm2723_vm6, %v2722_v33, %v2717_v37  ;;  %4765 = vrcp.f32 %v5979_v39 }
 0x49f   : > { %v2167_v12 = vpop.xlane.xlu0 %2166  ;;  %v4752_v38 = vpop.eup %4751  ;;  %v2743_v55 = vrot.slane %v4750_v48, %v6006_v52  ;;  %v2731_v18 = vsel %vm2730_vm9, %v2729_v58, %v2724_v54  ;;  %v6071_v39 = vsub.s32 %v2781_v9, %v5911_v53  ;;  %v6086_v46 = vsub.s32 %v2788_v32, %v5911_v53 }
 0x4a0   : > { %v2177_v43 = vpop.xlane.xlu1 %2176  ;;  %v2738_v17 = vsel %vm2737_vm10, %v2736_v51, %v2731_v18  ;;  %v2757_v57 = vrot.slane %v4752_v38, %v6010_v49  ;;  %4767 = vrcp.f32 %v2167_v12  ;;  %v6090_v44 = vsub.s32 %v2795_v2, %v5911_v53 }
 0x4a1   : > { %v2745_v31 = vsel %vm2744_vm11, %v2743_v55, %v2738_v17 }
 0x4a2   : > { %v4754_v26 = vpop.eup %4753 }
 0x4a3   : > { %v4756_v0 = vpop.eup %4755  ;;  %v2945_v5 = vrot.slane %v4754_v26, %v6048_v21  ;;  %v2227_v28 = vpop.xlane.xlu0 %2226 }
 0x4a4   : > { %v6056_v11 = vpop.xlane.xlu1 %2180  ;;  %v4758_v40 = vpop.eup %4757  ;;  %v2750_v7 = vrot.slane %v4756_v0, %v6013_v25 }
 0x4a5   : > { %v6062_v62 = vsel %vm2779_vm1, %v2945_v5, %v2941_v63  ;;  %v4760_v24 = vpop.eup %4759  ;;  %v2771_v41 = vrot.slane %v4758_v40, %v6018_v29  ;;  %v6094_v63 = vsub.s32 %v2802_v6, %v5911_v53 }
 0x4a6   : > { %v2752_v4 = vsel %vm2751_vm12, %v2750_v7, %v2745_v31  ;;  %v4762_v16 = vpop.eup %4761  ;;  %v2764_v20 = vrot.slane %v4760_v24, %v6024_v1 }
 0x4a7   : > { %v2165_v19 = vpop.xlane.xlu0 %2164  ;;  %v2759_v45 = vsel %vm2758_vm13, %v2757_v57, %v2752_v4  ;;  %v4764_v34 = vpop.eup %4763  ;;  %v2785_v47 = vrot.slane %v4762_v16, %v6071_v39 }
 0x4a8   : > { %4769 = vrcp.f32 %v2165_v19  ;;  %v6066_v14 = vpop.xlane.xlu1 %2184  ;;  %v2766_v60 = vsel %vm2765_vm15, %v2764_v20, %v2759_v45  ;;  %v2778_v59 = vrot.slane %v4764_v34, %v6048_v21  ;;  %v4766_v48 = vpop.eup %4765 }
 0x4a9   : > { %4771 = vrcp.f32 %v2227_v28  ;;  %v2773_v35 = vsel %vm2772_vm14, %v2771_v41, %v2766_v60  ;;  %v2792_v12 = vrot.slane %v4766_v48, %v6086_v46 }
 0x4aa   : > { %v2780_v33 = vsel %vm2779_vm1, %v2778_v59, %v2773_v35  ;;  %v4768_v36 = vpop.eup %4767 }
 0x4ab   : > { %v2225_v15 = vpop.xlane.xlu0 %2224  ;;  %v2806_v53 = vrot.slane %v4768_v36, %v6094_v63 }
 0x4ac   : > { %4773 = vrcp.f32 %v2225_v15  ;;  %v6076_v13 = vpop.xlane.xlu1 %2190 }
 0x4ad   : > { %4775 = vrcp.f32 %v5993_v23 }
 0x4ae   : > { %4777 = vrcp.f32 %v6003_v10  ;;  %v2787_v10 = vsel %vm2786_vm2, %v2785_v47, %v2780_v33 }
 0x4af   : > { %4779 = vrcp.f32 %v6020_v50  ;;  %v2169_v22 = vpop.xlane.xlu0 %2168  ;;  %v2794_v37 = vsel %vm2793_vm3, %v2792_v12, %v2787_v10 }
 0x4b0   : > { %4781 = vrcp.f32 %v2169_v22  ;;  %v2189_v23 = vpop.xlane.xlu1 %2188 }
 0x4b1   : > { %4783 = vrcp.f32 %v2177_v43 }
 0x4b2   : > { %v4770_v58 = vpop.eup %4769  ;;  %4785 = vrcp.f32 %v6034_v56 }
 0x4b3   : > { %v4120_v50 = vpop.f32.mrb[32].mxu0  ;;  %v2799_v51 = vrot.slane %v4770_v58, %v6090_v44  ;;  %v6099_v38 = vpop.xlane.xlu0 %2230  ;;  %4787 = vrcp.f32 %v6056_v11 }
 0x4b4   : > { %v2195_v55 = vpop.xlane.xlu1 %2194  ;;  %v2402_v26 = vpop.f32.mrb[33].mxu0 }
 0x4b5   : > { %v4772_v54 = vpop.eup %4771  ;;  %v2801_v0 = vsel %vm2800_vm8, %v2799_v51, %v2794_v37 }
 0x4b6   : > { %v4774_v18 = vpop.eup %4773  ;;  %v2808_v43 = vsel %vm2807_vm0, %v2806_v53, %v2801_v0  ;;  %v2955_v24 = vrot.slane %v4772_v54, %v6086_v46 }
 0x4b7   : > { %v4776_v5 = vpop.eup %4775  ;;  %v2950_v28 = vrot.slane %v4774_v18, %v6071_v39  ;;  %v3080_v17 = vmul.f32 %v2808_v43, %v2402_v26  ;;  %v6107_v9 = vpop.f32.mrb[56].mxu1  ;;  %v3081_v20 = vmul.f32 %v4120_v50, %v2808_v43 }
 0x4b8   : > { %v6109_v31 = vpop.xlane.xlu0 %2228  ;;  %v4778_v57 = vpop.eup %4777  ;;  %v2816_v41 = vrot.slane %v4776_v5, %v5922_v42 }
 0x4b9   : > { %v6111_v40 = vpop.f32.mrb[57].mxu1  ;;  %v2199_v7 = vpop.xlane.xlu1 %2198  ;;  %3099 = vxpose.xlu0.b32.start [1/8] (short) %v3080_v17, 128  ;;  %v2951_v56 = vsel %vm2786_vm2, %v2950_v28, %v6062_v62  ;;  %v2826_v11 = vrot.slane %v4778_v57, %v5934_v8 }
 0x4ba   : > { %v4780_v19 = vpop.eup %4779  ;;  %v6118_v45 = vsel %vm2793_vm3, %v2955_v24, %v2951_v56 }
 0x4bb   : > { %v4782_v4 = vpop.eup %4781  ;;  %v2821_v34 = vrot.slane %v4780_v19, %v5925_v27 }
 0x4bc   : > { %v2812_v16 = vrot.slane %v4782_v4, %v5919_v3  ;;  %v2183_v32 = vpop.xlane.xlu0 %2182  ;;  %v4784_v2 = vpop.eup %4783 }
 0x4bd   : > { %4789 = vrcp.f32 %v2183_v32  ;;  %v2235_v15 = vpop.xlane.xlu1 %2234  ;;  %3100 = vxpose.xlu0.b32.cont [2/8] (short) %v3081_v20, 128  ;;  %v4786_v35 = vpop.eup %4785  ;;  %v2831_v59 = vrot.slane %v4784_v2, %v5945_v30 }
 0x4be   : > { %4791 = vrcp.f32 %v6066_v14  ;;  %v2817_v62 = vsel %vm2709_vm4, %v2816_v41, %v2812_v16  ;;  %v4788_v33 = vpop.eup %4787  ;;  %v2836_v14 = vrot.slane %v4786_v35, %v5967_v61 }
 0x4bf   : > { %4793 = vrcp.f32 %v6076_v13  ;;  %v2822_v60 = vsel %vm2716_vm5, %v2821_v34, %v2817_v62 }
 0x4c0   : > { %v2827_v6 = vsel %vm2723_vm6, %v2826_v11, %v2822_v60  ;;  %4795 = vrcp.f32 %v2189_v23  ;;  %v2187_v47 = vpop.xlane.xlu0 %2186  ;;  %v2841_v23 = vrot.slane %v4788_v33, %v6006_v52 }
 0x4c1   : > { %4797 = vrcp.f32 %v2187_v47  ;;  %v2239_v48 = vpop.xlane.xlu1 %2238  ;;  %v2832_v22 = vsel %vm2730_vm9, %v2831_v59, %v2827_v6 }
 0x4c2   : > { %v2837_v13 = vsel %vm2737_vm10, %v2836_v14, %v2832_v22 }
 0x4c3   : > { %v2842_v53 = vsel %vm2744_vm11, %v2841_v23, %v2837_v13 }
 0x4c4   : > { %v2193_v36 = vpop.xlane.xlu0 %2192 }
 0x4c5   : > { %4799 = vrcp.f32 %v2193_v36  ;;  %v2237_v10 = vpop.xlane.xlu1 %2236 }
 0x4c6   : > { %4801 = vrcp.f32 %v2195_v55 }
 0x4c7   : > { %v4790_v58 = vpop.eup %4789  ;;  %4803 = vrcp.f32 %v2199_v7 }
 0x4c8   : > { %v4792_v12 = vpop.eup %4791  ;;  %v2846_v50 = vrot.slane %v4790_v58, %v6013_v25  ;;  %v2197_v51 = vpop.xlane.xlu0 %2196 }
 0x4c9   : > { %v4794_v37 = vpop.eup %4793  ;;  %4805 = vrcp.f32 %v2197_v51  ;;  %v2243_v26 = vpop.xlane.xlu1 %2242  ;;  %v2851_v18 = vrot.slane %v4792_v12, %v6010_v49 }
 0x4ca   : > { %v4796_v54 = vpop.eup %4795  ;;  %v2847_v0 = vsel %vm2751_vm12, %v2846_v50, %v2842_v53  ;;  %4807 = vrcp.f32 %v2235_v15  ;;  %v2866_v7 = vrot.slane %v4794_v37, %v6048_v21 }
 0x4cb   : > { %v4798_v55 = vpop.eup %4797  ;;  %4809 = vrcp.f32 %v2239_v48  ;;  %v2861_v28 = vrot.slane %v4796_v54, %v6018_v29  ;;  %v2852_v17 = vsel %vm2758_vm13, %v2851_v18, %v2847_v0 }
 0x4cc   : > { %v2856_v43 = vrot.slane %v4798_v55, %v6024_v1  ;;  %4811 = vrcp.f32 %v2237_v10  ;;  %v2233_v5 = vpop.xlane.xlu0 %2232 }
 0x4cd   : > { %4813 = vrcp.f32 %v2233_v5  ;;  %v2247_v57 = vpop.xlane.xlu1 %2246 }
 0x4ce   : > { %v2857_v24 = vsel %vm2765_vm15, %v2856_v43, %v2852_v17 }
 0x4cf   : > { %v4800_v19 = vpop.eup %4799  ;;  %v2862_v56 = vsel %vm2772_vm14, %v2861_v28, %v2857_v24 }
 0x4d0   : > { %v4802_v4 = vpop.eup %4801  ;;  %v2871_v41 = vrot.slane %v4800_v19, %v6071_v39  ;;  %v2241_v16 = vpop.xlane.xlu0 %2240  ;;  %v2867_v20 = vsel %vm2779_vm1, %v2866_v7, %v2862_v56 }
 0x4d1   : > { %4815 = vrcp.f32 %v2241_v16  ;;  %v2251_v32 = vpop.xlane.xlu1 %2250  ;;  %v4804_v34 = vpop.eup %4803  ;;  %v2876_v11 = vrot.slane %v4802_v4, %v6086_v46 }
 0x4d2   : > { %4817 = vrcp.f32 %v2243_v26  ;;  %v2872_v15 = vsel %vm2786_vm2, %v2871_v41, %v2867_v20  ;;  %v2886_v35 = vrot.slane %v4804_v34, %v6094_v63 }
 0x4d3   : > { %v4806_v2 = vpop.eup %4805  ;;  %4819 = vrcp.f32 %v2247_v57  ;;  %v2877_v48 = vsel %vm2793_vm3, %v2876_v11, %v2872_v15 }
 0x4d4   : > { %v4808_v62 = vpop.eup %4807  ;;  %v2881_v60 = vrot.slane %v4806_v2, %v6090_v44  ;;  %v2245_v6 = vpop.xlane.xlu0 %2244 }
 0x4d5   : > { %v4810_v47 = vpop.eup %4809  ;;  %4821 = vrcp.f32 %v2245_v6  ;;  %v2249_v59 = vpop.xlane.xlu1 %2248  ;;  %v2974_v10 = vrot.slane %v4808_v62, %v5922_v42 }
 0x4d6   : > { %v4812_v22 = vpop.eup %4811  ;;  %4823 = vrcp.f32 %v2249_v59  ;;  %v2882_v33 = vsel %vm2800_vm8, %v2881_v60, %v2877_v48  ;;  %v2984_v51 = vrot.slane %v4810_v47, %v5934_v8 }
 0x4d7   : > { %v4814_v14 = vpop.eup %4813  ;;  %v2887_v36 = vsel %vm2807_vm0, %v2886_v35, %v2882_v33  ;;  %v2979_v12 = vrot.slane %v4812_v22, %v5925_v27  ;;  %4825 = vrcp.f32 %v2251_v32 }
 0x4d8   : > { %v2970_v13 = vrot.slane %v4814_v14, %v5919_v3  ;;  %v2257_v58 = vpop.xlane.xlu0 %2256  ;;  %v3082_v23 = vmul.f32 %v2887_v36, %v6111_v40  ;;  %v3083_v40 = vmul.f32 %v6107_v9, %v2887_v36 }
 0x4d9   : > { %v2255_v50 = vpop.xlane.xlu1 %2254  ;;  %4827 = vrcp.f32 %v2257_v58 }
 0x4da   : > { %v2975_v37 = vsel %vm2709_vm4, %v2974_v10, %v2970_v13  ;;  %3101 = vxpose.xlu0.b32.cont [3/8] (short) %v3082_v23, 128  ;;  %4829 = vrcp.f32 %v2255_v50 }
 0x4db   : > { %v4816_v53 = vpop.eup %4815  ;;  %v2980_v26 = vsel %vm2716_vm5, %v2979_v12, %v2975_v37 }
 0x4dc   : > { %v4818_v54 = vpop.eup %4817  ;;  %v2985_v42 = vsel %vm2723_vm6, %v2984_v51, %v2980_v26  ;;  %v2989_v3 = vrot.slane %v4816_v53, %v5945_v30  ;;  %v2261_v55 = vpop.xlane.xlu0 %2260 }
 0x4dd   : > { %v2253_v27 = vpop.xlane.xlu1 %2252  ;;  %v4820_v0 = vpop.eup %4819  ;;  %v2994_v43 = vrot.slane %v4818_v54, %v5967_v61 }
 0x4de   : > { %v2990_v8 = vsel %vm2730_vm9, %v2989_v3, %v2985_v42  ;;  %4831 = vrcp.f32 %v2253_v27  ;;  %3102 = vxpose.xlu0.b32.cont [4/8] (short) %v3083_v40, 128  ;;  %v3004_v17 = vrot.slane %v4820_v0, %v6013_v25 }
 0x4df   : > { %v4822_v18 = vpop.eup %4821  ;;  %4833 = vrcp.f32 %v6109_v31  ;;  %v2995_v30 = vsel %vm2737_vm10, %v2994_v43, %v2990_v8 }
 0x4e0   : > { %v4824_v5 = vpop.eup %4823  ;;  %v2999_v28 = vrot.slane %v4822_v18, %v6006_v52  ;;  %4835 = vrcp.f32 %v2261_v55  ;;  %v3581_v55 = vld [vmem:[%s6265_s5] ss:$0 sm:$0xff] }
 0x4e1   : > { %v2259_v9 = vpop.xlane.xlu1 %2258  ;;  %v3009_v7 = vrot.slane %v4824_v5, %v6010_v49  ;;  %v4826_v19 = vpop.eup %4825 }
 0x4e2   : > { %v3000_v57 = vsel %vm2744_vm11, %v2999_v28, %v2995_v30  ;;  %4837 = vrcp.f32 %v2259_v9  ;;  %v3014_v41 = vrot.slane %v4826_v19, %v6024_v1 }
 0x4e3   : > { %v3005_v24 = vsel %vm2751_vm12, %v3004_v17, %v3000_v57  ;;  %4839 = vrcp.f32 %v6099_v38  ;;  %v4828_v31 = vpop.eup %4827 }
 0x4e4   : > { %v4830_v52 = vpop.eup %4829  ;;  %v3010_v56 = vsel %vm2758_vm13, %v3009_v7, %v3005_v24  ;;  %v3029_v34 = vrot.slane %v4828_v31, %v6071_v39 }
 0x4e5   : > { %v2263_v61 = vpop.xlane.xlu1 %2262  ;;  %v3024_v20 = vrot.slane %v4830_v52, %v6048_v21  ;;  %v3015_v49 = vsel %vm2765_vm15, %v3014_v41, %v3010_v56 }
 0x4e6   : > { %4841 = vrcp.f32 %v2263_v61 }
 0x4e8   : > { %v4832_v4 = vpop.eup %4831 }
 0x4e9   : > { %v3019_v25 = vrot.slane %v4832_v4, %v6018_v29  ;;  %v4834_v16 = vpop.eup %4833 }
 0x4ea   : > { %v4836_v32 = vpop.eup %4835  ;;  %v2960_v11 = vrot.slane %v4834_v16, %v6090_v44 }
 0x4eb   : > { %v3020_v38 = vsel %vm2772_vm14, %v3019_v25, %v3015_v49  ;;  %v3039_v29 = vrot.slane %v4836_v32, %v6090_v44 }
 0x4ec   : > { %v4838_v15 = vpop.eup %4837  ;;  %v3025_v2 = vsel %vm2779_vm1, %v3024_v20, %v3020_v38  ;;  %v2961_v39 = vsel %vm2800_vm8, %v2960_v11, %v6118_v45 }
 0x4ed   : > { %v3030_v62 = vsel %vm2786_vm2, %v3029_v34, %v3025_v2  ;;  %v3034_v1 = vrot.slane %v4838_v15, %v6086_v46  ;;  %v4840_v60 = vpop.eup %4839 }
 0x4ee   : > { %v2965_v59 = vrot.slane %v4840_v60, %v6094_v63 }
 0x4ef   : > { %v3035_v21 = vsel %vm2793_vm3, %v3034_v1, %v3030_v62 }
 0x4f0   : > { %v4842_v6 = vpop.eup %4841  ;;  %v3040_v47 = vsel %vm2800_vm8, %v3039_v29, %v3035_v21  ;;  %v2966_v46 = vsel %vm2807_vm0, %v2965_v59, %v2961_v39 }
 0x4f1   : > { %v3044_v35 = vrot.slane %v4842_v6, %v6094_v63 }
 0x4f3   : > { %v3045_v48 = vsel %vm2807_vm0, %v3044_v35, %v3040_v47  ;;  %v4190_v22 = vpop.f32.mrb[34].mxu0  ;;  %vm6329_vm0 = vcmask 261120  }
 0x4f4   : > { %v3085_v33 = vmul.f32 %v4190_v22, %v2966_v46  ;;  %v2552_v44 = vpop.f32.mrb[35].mxu0  ;;  %vm6330_vm4 = vmmov %vm6329_vm0 }
 0x4f5   : > { %v3084_v14 = vmul.f32 %v2966_v46, %v2552_v44  ;;  %vm6331_vm5 = vmmov %vm6329_vm0 }
 0x4f6   : > { %vm6332_vm6 = vmmov %vm6329_vm0 }
 0x4f7   : > { %v4225_v36 = vpop.f32.mrb[58].mxu1  ;;  %3103 = vxpose.xlu0.b32.cont [5/8] (short) %v3084_v14, 128  ;;  %vm6334_vm9 = vmmov %vm6329_vm0 }
 0x4f8   : > { %v3087_v10 = vmul.f32 %v4225_v36, %v3045_v48  ;;  %v2627_v13 = vpop.f32.mrb[59].mxu1  ;;  %vm6335_vm10 = vmmov %vm6329_vm0 }
 0x4f9   : > { %v3086_v58 = vmul.f32 %v3045_v48, %v2627_v13  ;;  %vm6336_vm11 = vmmov %vm6329_vm0 }
 0x4fa   : > { %vm6337_vm12 = vmmov %vm6329_vm0 }
 0x4fb   : > { %3104 = vxpose.xlu0.b32.cont [6/8] (short) %v3085_v33, 128  ;;  %vm6338_vm13 = vmmov %vm6329_vm0 }
 0x4fc   : > { %vm6339_vm14 = vmmov %vm6329_vm0 }
 0x4fd   : > { %vm6340_vm15 = vmmov %vm6329_vm0 }
 0x4fe   : > { %vm6341_vm1 = vmmov %vm6329_vm0 }
 0x4ff   : > { %3105 = vxpose.xlu0.b32.cont [7/8] (short) %v3086_v58, 128  ;;  %vm6342_vm2 = vmmov %vm6329_vm0 }
 0x500   : > { %vm6343_vm3 = vmmov %vm6329_vm0 }
 0x501   : > { %vm6344_vm8 = vmmov %vm6329_vm0 }
 0x503   : > { %3106 = vxpose.xlu0.b32.end [8/8] (short) %v3087_v10, 128 }
 0x567   : > { %v3115_v45 = vpop.trf.xlu0 }
 0x568   : > { %4234 = vmatprep.mubr.msk.f32.mxu0 %vm3131_vm7, %v3115_v45 }
 0x56b   : > { %v3116_v63 = vpop.trf.xlu0 }
 0x56c   : > { %4235 = vmatmul.mubr.msk.f32.vlgmr.msra.gmra.mrb[36].mxu0 %vm3131_vm7, %v3116_v63 }
 0x56f   : > { %v3117_v23 = vpop.trf.xlu0 }
 0x570   : > { %4237 = vmatprep.mubr.msk.f32.mxu0 %vm3131_vm7, %v3117_v23 }
 0x573   : > { %v3118_v12 = vpop.trf.xlu0 }
 0x574   : > { %4238 = vmatmul.mubr.msk.f32.gmra.mrb[38].mxu0 %vm3131_vm7, %v3118_v12 }
 0x577   : > { %v3119_v50 = vpop.trf.xlu0 }
 0x578   : > { %4240 = vmatprep.mubr.msk.f32.mxu0 %vm3131_vm7, %v3119_v50 }
 0x57b   : > { %v3120_v51 = vpop.trf.xlu0 }
 0x57c   : > { %4241 = vmatmul.mubr.msk.f32.gmra.mrb[40].mxu0 %vm3131_vm7, %v3120_v51 }
 0x57f   : > { %v3121_v37 = vpop.trf.xlu0 }
 0x580   : > { %4243 = vmatprep.mubr.msk.f32.mxu0 %vm3131_vm7, %v3121_v37 }
 0x583   : > { %v3122_v53 = vpop.trf.xlu0 }
 0x584   : > { %4244 = vmatmul.mubr.msk.f32.gmra.mrb[42].mxu0 %vm3131_vm7, %v3122_v53 }
 0x587   : > { %v3123_v26 = vpop.trf.xlu0 }
 0x588   : > { %4246 = vmatprep.mubr.msk.f32.mxu1 %vm3131_vm7, %v3123_v26 }
 0x58b   : > { %v3124_v54 = vpop.trf.xlu0 }
 0x58c   : > { %4247 = vmatmul.mubr.msk.f32.vlgmr.msra.gmra.mrb[60].mxu1 %vm3131_vm7, %v3124_v54 }
 0x58f   : > { %v3125_v42 = vpop.trf.xlu0 }
 0x590   : > { %4249 = vmatprep.mubr.msk.f32.mxu1 %vm3131_vm7, %v3125_v42 }
 0x593   : > { %v3126_v3 = vpop.trf.xlu0 }
 0x594   : > { %4250 = vmatmul.mubr.msk.f32.gmra.mrb[62].mxu1 %vm3131_vm7, %v3126_v3 }
 0x597   : > { %v3127_v40 = vpop.trf.xlu0 }
 0x598   : > { %4252 = vmatprep.mubr.msk.f32.mxu1 %vm3131_vm7, %v3127_v40 }
 0x59b   : > { %v3128_v27 = vpop.trf.xlu0 }
 0x59c   : > { %4253 = vmatmul.mubr.msk.f32.gmra.mrb[64].mxu1 %vm3131_vm7, %v3128_v27 }
 0x59f   : > { %v3129_v0 = vpop.trf.xlu0 }
 0x5a0   : > { %4255 = vmatprep.mubr.msk.f32.mxu1 %vm3131_vm7, %v3129_v0 }
 0x5a3   : > { %v3130_v8 = vpop.trf.xlu0 }
 0x5a4   : > { %4256 = vmatmul.mubr.msk.f32.gmra.mrb[66].mxu1 %vm3131_vm7, %v3130_v8  ;;  %vm6333_vm7 = vmmov %vm6329_vm0 }
 0x63f   : > { %v4236_v18 = vpop.f32.mrb[36].mxu0 }
 0x640   : > { %v3264_v43 = vadd.f32 %v4236_v18, %v3581_v55  ;;  %v3258_v5 = vpop.f32.mrb[37].mxu0 }
 0x641   : > { %v3259_v28 = vadd.f32 %v3581_v55, %v3258_v5 }
 0x642   : > { %3338 = vst.msk [vmem:[%s6217_s8 + $0x8] sm:$0xff] %vm6329_vm0, %v3264_v43 }
 0x643   : > { %3337 = vst.msk [vmem:[%s6217_s8] sm:$0xff] %vm6330_vm4, %v3259_v28 }
 0x647   : > { %v4239_v30 = vpop.f32.mrb[38].mxu0 }
 0x648   : > { %v3274_v9 = vadd.f32 %v4239_v30, %v3581_v55  ;;  %v3268_v17 = vpop.f32.mrb[39].mxu0 }
 0x649   : > { %v3269_v57 = vadd.f32 %v3581_v55, %v3268_v17 }
 0x64a   : > { %3340 = vst.msk [vmem:[%s6217_s8 + $0x18] sm:$0xff] %vm6331_vm5, %v3274_v9 }
 0x64b   : > { %3339 = vst.msk [vmem:[%s6217_s8 + $0x10] sm:$0xff] %vm6332_vm6, %v3269_v57 }
 0x64f   : > { %v4242_v7 = vpop.f32.mrb[40].mxu0 }
 0x650   : > { %v3284_v24 = vadd.f32 %v4242_v7, %v3581_v55  ;;  %v3278_v19 = vpop.f32.mrb[41].mxu0 }
 0x651   : > { %v3279_v61 = vadd.f32 %v3581_v55, %v3278_v19 }
 0x652   : > { %3342 = vst.msk [vmem:[%s6217_s8 + $0x28] sm:$0xff] %vm6333_vm7, %v3284_v24 }
 0x653   : > { %3341 = vst.msk [vmem:[%s6217_s8 + $0x20] sm:$0xff] %vm6334_vm9, %v3279_v61 }
 0x657   : > { %v4245_v31 = vpop.f32.mrb[42].mxu0 }
 0x658   : > { %v3294_v52 = vadd.f32 %v4245_v31, %v3581_v55  ;;  %v3288_v56 = vpop.f32.mrb[43].mxu0 }
 0x659   : > { %v3289_v4 = vadd.f32 %v3581_v55, %v3288_v56 }
 0x65a   : > { %3344 = vst.msk [vmem:[%s6217_s8 + $0x38] sm:$0xff] %vm6335_vm10, %v3294_v52 }
 0x65b   : > { %3343 = vst.msk [vmem:[%s6217_s8 + $0x30] sm:$0xff] %vm6336_vm11, %v3289_v4 }
 0x65f   : > { %v4248_v41 = vpop.f32.mrb[60].mxu1 }
 0x660   : > { %v3304_v25 = vadd.f32 %v4248_v41, %v3581_v55  ;;  %v3298_v16 = vpop.f32.mrb[61].mxu1 }
 0x661   : > { %v3299_v20 = vadd.f32 %v3581_v55, %v3298_v16 }
 0x662   : > { %3346 = vst.msk [vmem:[%s6217_s8 + $0x48] sm:$0xff] %vm6337_vm12, %v3304_v25 }
 0x663   : > { %3345 = vst.msk [vmem:[%s6217_s8 + $0x40] sm:$0xff] %vm6338_vm13, %v3299_v20 }
 0x667   : > { %v4251_v49 = vpop.f32.mrb[62].mxu1 }
 0x668   : > { %v3314_v32 = vadd.f32 %v4251_v49, %v3581_v55  ;;  %v3308_v34 = vpop.f32.mrb[63].mxu1 }
 0x669   : > { %v3309_v38 = vadd.f32 %v3581_v55, %v3308_v34 }
 0x66a   : > { %3348 = vst.msk [vmem:[%s6217_s8 + $0x58] sm:$0xff] %vm6339_vm14, %v3314_v32 }
 0x66b   : > { %3347 = vst.msk [vmem:[%s6217_s8 + $0x50] sm:$0xff] %vm6340_vm15, %v3309_v38 }
 0x66f   : > { %v4254_v15 = vpop.f32.mrb[64].mxu1 }
 0x670   : > { %v3324_v2 = vadd.f32 %v4254_v15, %v3581_v55  ;;  %v3318_v11 = vpop.f32.mrb[65].mxu1 }
 0x671   : > { %v3319_v62 = vadd.f32 %v3581_v55, %v3318_v11 }
 0x672   : > { %3350 = vst.msk [vmem:[%s6217_s8 + $0x68] sm:$0xff] %vm6341_vm1, %v3324_v2 }
 0x673   : > { %3349 = vst.msk [vmem:[%s6217_s8 + $0x60] sm:$0xff] %vm6342_vm2, %v3319_v62 }
 0x677   : > { %v4257_v1 = vpop.f32.mrb[66].mxu1 }
 0x678   : > { %v3334_v29 = vadd.f32 %v4257_v1, %v3581_v55  ;;  %v3328_v60 = vpop.f32.mrb[67].mxu1 }
 0x679   : > { %v3329_v21 = vadd.f32 %v3581_v55, %v3328_v60 }
 0x67a   : > { %3352 = vst.msk [vmem:[%s6217_s8 + $0x78] sm:$0xff] %vm6343_vm3, %v3334_v29 }
 0x67b   : > { %3351 = vst.msk [vmem:[%s6217_s8 + $0x70] sm:$0xff] %vm6344_vm8, %v3329_v21 }
 0x67c PF: > { %s16_s23 = sadd.s32 1, %s4865_s23   ;;  %s6345_s21 = smov %s4861_s22 }
 0x67d   : > { %p13_p5 = scmp.ge.s32.totalorder %s16_s23, 4   ;;  %s6346_s22 = smov %s6348_s24 }
 0x67f   :  { %15 = sbr.rel (!%p13_p5) target bundleno = 2 (0x2), region = 79 }

</bundles_post_ra>
